<compile_context>
chip_gen: v7x
topology: tpu7x:2x2x1
jax: 0.10.0
libtpu: 0.0.40
codegen_flags: <defaults>
</compile_context>

<pallas_src>
import functools

import jax
import jax.numpy as jnp
from jax.experimental import pallas as pl
from jax.experimental.pallas import tpu as pltpu

_VMEM_LIMIT_BYTES = 32 * 1024 * 1024  # explicit; fits v5e/v6e/v7x scoped VMEM


def _round_up(x, m):
    return (x + m - 1) // m * m


def _pick_row_tile(m, target=512):
    # Largest row tile <= target; a full-M block when M already fits (full-dim
    # blocks are always layout-legal).  512-row tiles sit near the HBM roofline.
    return m if m <= target else target


def _pad_k(x, w):
    """Zero-pad the shared contraction dim to a multiple of 128 (exact math)."""
    k = x.shape[1]
    kp = _round_up(k, 128)
    if kp != k:
        x = jnp.pad(x, ((0, 0), (0, kp - k)))
        w = jnp.pad(w, ((0, kp - k), (0, 0)))
    return x, w


# ----------------------------------------------------------------------------
# Kernel 1: tiled  out = relu?(x @ w + b)   (bf16 MXU inputs, f32 epilogue)
# ----------------------------------------------------------------------------
def _matmul_bias_act_kernel(x_ref, w_ref, b_ref, o_ref, *, apply_relu):
    acc = jnp.dot(x_ref[...], w_ref[...], preferred_element_type=jnp.float32)
    acc = acc + b_ref[...]                      # (1, N) f32 broadcast over rows
    if apply_relu:
        acc = jnp.maximum(acc, 0.0)
    o_ref[...] = acc.astype(o_ref.dtype)


def matmul_bias_act(x, w, b, *, relu, out_dtype, block_m=512):
    x = x.astype(jnp.bfloat16)
    w = w.astype(jnp.bfloat16)
    x, w = _pad_k(x, w)
    m, k = x.shape
    _, n = w.shape
    b2 = b.reshape(1, n).astype(jnp.float32)

    bm = _pick_row_tile(m, block_m)
    grid = (pl.cdiv(m, bm),)
    return pl.pallas_call(
        functools.partial(_matmul_bias_act_kernel, apply_relu=relu),
        out_shape=jax.ShapeDtypeStruct((m, n), out_dtype),
        grid=grid,
        in_specs=[
            pl.BlockSpec((bm, k), lambda i: (i, 0)),   # row-tiled activations
            pl.BlockSpec((k, n), lambda i: (0, 0)),    # weight resident
            pl.BlockSpec((1, n), lambda i: (0, 0)),    # bias resident
        ],
        out_specs=pl.BlockSpec((bm, n), lambda i: (i, 0)),
        compiler_params=pltpu.CompilerParams(
            dimension_semantics=("parallel",),
            vmem_limit_bytes=_VMEM_LIMIT_BYTES,
        ),
    )(x, w, b2)


# ----------------------------------------------------------------------------
# Kernel 2: fused FC head  out = relu(x @ w1 + b1) @ w2 + b2
# (hidden activation stays in VMEM; no standalone (B, n_actions) launch)
# ----------------------------------------------------------------------------
def _fc_head_kernel(x_ref, w1_ref, b1_ref, w2_ref, b2_ref, o_ref):
    h = jnp.dot(x_ref[...], w1_ref[...], preferred_element_type=jnp.float32)
    h = jnp.maximum(h + b1_ref[...], 0.0)
    y = jnp.dot(h.astype(jnp.bfloat16), w2_ref[...],
                preferred_element_type=jnp.float32)
    o_ref[...] = (y + b2_ref[...]).astype(o_ref.dtype)


def fc_head(x, w1, b1, w2, b2, *, block_m=512):
    x = x.astype(jnp.bfloat16)
    w1 = w1.astype(jnp.bfloat16)
    x, w1 = _pad_k(x, w1)
    w2 = w2.astype(jnp.bfloat16)
    m, k = x.shape
    _, hdim = w1.shape
    _, n = w2.shape
    b1r = b1.reshape(1, hdim).astype(jnp.float32)
    b2r = b2.reshape(1, n).astype(jnp.float32)

    bm = _pick_row_tile(m, block_m)
    grid = (pl.cdiv(m, bm),)
    return pl.pallas_call(
        _fc_head_kernel,
        out_shape=jax.ShapeDtypeStruct((m, n), jnp.float32),
        grid=grid,
        in_specs=[
            pl.BlockSpec((bm, k), lambda i: (i, 0)),
            pl.BlockSpec((k, hdim), lambda i: (0, 0)),
            pl.BlockSpec((1, hdim), lambda i: (0, 0)),
            pl.BlockSpec((hdim, n), lambda i: (0, 0)),
            pl.BlockSpec((1, n), lambda i: (0, 0)),
        ],
        out_specs=pl.BlockSpec((bm, n), lambda i: (i, 0)),
        compiler_params=pltpu.CompilerParams(
            dimension_semantics=("parallel",),
            vmem_limit_bytes=_VMEM_LIMIT_BYTES,
        ),
    )(x, w1, b1r, w2, b2r)


# ----------------------------------------------------------------------------
# Conv layers: NHWC im2col (bf16) + Pallas matmul; no NCHW round trips.
# ----------------------------------------------------------------------------
def _im2col_nhwc(x, k, s):
    # TODO(synk): fuse patch extraction into the Pallas kernel from a
    # VMEM-resident input tile (needs Mosaic-safe strided sublane gathers);
    # done here in plain-JAX glue, in bf16 to halve the HBM patch round-trip.
    B, H, W, C = x.shape
    OH = (H - k) // s + 1
    OW = (W - k) // s + 1
    taps = []
    for di in range(k):
        for dj in range(k):
            taps.append(x[:, di:di + s * OH:s, dj:dj + s * OW:s, :])  # (B,OH,OW,C)
    p = jnp.stack(taps, axis=3)                  # (B, OH, OW, k*k, C)
    p = p.reshape(B * OH * OW, k * k * C)        # columns in (di, dj, c) order
    return p, OH, OW


def conv2d_relu_nhwc(x, w, b, stride):
    """x: (B, H, W, Cin) NHWC;  w: (OC, IC, k, k) PyTorch layout.  NHWC bf16 out."""
    B = x.shape[0]
    OC, IC, k, _ = w.shape
    patches, OH, OW = _im2col_nhwc(x.astype(jnp.bfloat16), k, stride)
    w2 = w.transpose(2, 3, 1, 0).reshape(k * k * IC, OC)   # rows in (di,dj,ic) order
    y = matmul_bias_act(patches, w2, b, relu=True, out_dtype=jnp.bfloat16)
    return y.reshape(B, OH, OW, OC)


# ----------------------------------------------------------------------------
# Parameters (PyTorch layouts) and forward pass
# ----------------------------------------------------------------------------
def init_params(key, input_shape, n_actions, h, w):
    C = input_shape[0]
    keys = jax.random.split(key, 10)

    def conv_w(k_, oc, ic, ks):
        fan_in = ic * ks * ks
        return jax.random.normal(k_, (oc, ic, ks, ks), jnp.float32) / jnp.sqrt(fan_in)

    params = {}
    params["c1_w"] = conv_w(keys[0], 32, C, 8)
    params["c1_b"] = jax.random.normal(keys[1], (32,), jnp.float32) * 0.01
    params["c2_w"] = conv_w(keys[2], 64, 32, 4)
    params["c2_b"] = jax.random.normal(keys[3], (64,), jnp.float32) * 0.01
    params["c3_w"] = conv_w(keys[4], 64, 64, 3)
    params["c3_b"] = jax.random.normal(keys[5], (64,), jnp.float32) * 0.01

    # same arithmetic as _get_conv_out in the PyTorch module
    o1 = (h - 8) // 4 + 1
    o2 = (o1 - 4) // 2 + 1
    o3 = (o2 - 3) // 1 + 1
    conv_out = 64 * o3 * o3

    params["f1_w"] = jax.random.normal(keys[6], (conv_out, 512), jnp.float32) / jnp.sqrt(
        jnp.float32(conv_out))
    params["f1_b"] = jax.random.normal(keys[7], (512,), jnp.float32) * 0.01
    params["f2_w"] = jax.random.normal(keys[8], (512, n_actions), jnp.float32) / jnp.sqrt(512.0)
    params["f2_b"] = jax.random.normal(keys[9], (n_actions,), jnp.float32) * 0.01
    return params


def dqn_forward(params, x):
    # x: (B, F, C, H, W) — PyTorch does x.view(B, -1, H, W) then the NCHW conv
    # stack.  We merge frames/channels and relayout to NHWC exactly once.
    B = x.shape[0]
    H, W = x.shape[3], x.shape[4]
    x = x.reshape(B, -1, H, W).transpose(0, 2, 3, 1)     # (B, H, W, F*C)

    y = conv2d_relu_nhwc(x, params["c1_w"], params["c1_b"], stride=4)
    y = conv2d_relu_nhwc(y, params["c2_w"], params["c2_b"], stride=2)
    y = conv2d_relu_nhwc(y, params["c3_w"], params["c3_b"], stride=1)

    _, OH3, OW3, C3 = y.shape
    flat = y.reshape(B, OH3 * OW3 * C3)                  # NHWC-order flatten (free)
    # Fold PyTorch's channel-major flatten order into the fc1 weight instead of
    # transposing the activation tensor: row c*OH*OW+oh*OW+ow  ->  oh*OW*C+ow*C+c
    w1 = params["f1_w"].reshape(C3, OH3, OW3, 512).transpose(1, 2, 0, 3)
    w1 = w1.reshape(OH3 * OW3 * C3, 512)
    return fc_head(flat, w1, params["f1_b"], params["f2_w"], params["f2_b"])


def dqn_reference(params, x):
    """Plain-JAX (f32, XLA conv) reference mirroring the PyTorch module."""
    B = x.shape[0]
    H, W = x.shape[3], x.shape[4]
    y = x.reshape(B, -1, H, W)
    for wk, bk, s in (("c1_w", "c1_b", 4), ("c2_w", "c2_b", 2), ("c3_w", "c3_b", 1)):
        y = jax.lax.conv_general_dilated(
            y, params[wk], window_strides=(s, s), padding="VALID",
            dimension_numbers=("NCHW", "OIHW", "NCHW"))
        y = jnp.maximum(y + params[bk][None, :, None, None], 0.0)
    flat = y.reshape(B, -1)
    h = jnp.maximum(flat @ params["f1_w"] + params["f1_b"], 0.0)
    return h @ params["f2_w"] + params["f2_b"]


if __name__ == "__main__":
    # Small but conv-valid shapes: 44x44 -> 10x10 -> 4x4 -> 2x2 spatial.
    B, F, C, H, W = 2, 2, 2, 44, 44
    n_actions = 4

    key = jax.random.PRNGKey(0)
    k_x, k_p = jax.random.split(key)
    x = jax.random.normal(k_x, (B, F, C, H, W), jnp.float32)
    params = init_params(k_p, (F * C, H, W), n_actions, H, W)

    out = jax.jit(dqn_forward)(params, x)
    out = jax.block_until_ready(out)
    assert out.shape == (B, n_actions)
    assert jnp.all(jnp.isfinite(out))

    # Correctness vs. f32 XLA reference (loose tolerance: bf16 MXU inputs).
    ref = jax.jit(dqn_reference)(params, x)
    ref = jax.block_until_ready(ref)
    assert jnp.allclose(out, ref, rtol=1e-1, atol=1e-1), (out, ref)

    print("KERNEL_OK")
</pallas_src>

<mosaic_0001>
module attributes {stable_mosaic.version = 11 : i64} {
  func.func @_matmul_bias_act_kernel(%arg0: i32, %arg1: memref<200x256xbf16, #tpu.memory_space<vmem>>, %arg2: memref<256x32xbf16, #tpu.memory_space<vmem>>, %arg3: memref<1x32xf32, #tpu.memory_space<vmem>>, %arg4: memref<200x32xbf16, #tpu.memory_space<vmem>>) attributes {dimension_semantics = [#tpu.dimension_semantics<parallel>], iteration_bounds = array<i64: 1>, scalar_prefetch = 0 : i64, scratch_operands = 0 : i64, tpu.core_type = #tpu.core_type<tc>, window_params = [{transform_indices = @transform_0, window_bounds = array<i64: 200, 256>}, {pipeline_mode = #tpu.pipeline_mode<synchronous>, transform_indices = @transform_1, window_bounds = array<i64: 256, 32>}, {pipeline_mode = #tpu.pipeline_mode<synchronous>, transform_indices = @transform_2, window_bounds = array<i64: 1, 32>}, {transform_indices = @transform_3, window_bounds = array<i64: 200, 32>}]} {
    %c0 = arith.constant 0 : index
    %c0_0 = arith.constant 0 : index
    %0 = vector.load %arg1[%c0, %c0_0] : memref<200x256xbf16, #tpu.memory_space<vmem>>, vector<200x256xbf16>
    %c0_1 = arith.constant 0 : index
    %c0_2 = arith.constant 0 : index
    %1 = vector.load %arg2[%c0_1, %c0_2] : memref<256x32xbf16, #tpu.memory_space<vmem>>, vector<256x32xbf16>
    %cst = arith.constant dense<0.000000e+00> : vector<200x32xf32>
    %2 = tpu.matmul %0, %1, %cst {dimension_numbers = #tpu.dot_dimension_numbers<[1], [0], [0], [1], [0, 0, 1, 1], [], []>} : vector<200x256xbf16>, vector<256x32xbf16>, vector<200x32xf32> -> vector<200x32xf32>
    %c0_3 = arith.constant 0 : index
    %c0_4 = arith.constant 0 : index
    %3 = vector.load %arg3[%c0_3, %c0_4] : memref<1x32xf32, #tpu.memory_space<vmem>>, vector<1x32xf32>
    %4 = vector.broadcast %3 : vector<1x32xf32> to vector<200x32xf32>
    %5 = arith.addf %2, %4 : vector<200x32xf32>
    %cst_5 = arith.constant 0.000000e+00 : f32
    %6 = vector.broadcast %cst_5 : f32 to vector<200x32xf32>
    %7 = arith.maximumf %5, %6 : vector<200x32xf32>
    %8 = arith.truncf %7 : vector<200x32xf32> to vector<200x32xbf16>
    %c0_6 = arith.constant 0 : index
    %c0_7 = arith.constant 0 : index
    %9 = vector.load %arg4[%c0_6, %c0_7] : memref<200x32xbf16, #tpu.memory_space<vmem>>, vector<200x32xbf16>
    tpu.vector_store %arg4[%c0_6, %c0_7], %8 {strides = array<i32>} : memref<200x32xbf16, #tpu.memory_space<vmem>>, vector<200x32xbf16>,
    return
  }
  func.func @transform_0(%arg0: i32) -> (i32, i32) {
    %c0_i32 = arith.constant 0 : i32
    %c0_i32_0 = arith.constant 0 : i32
    return %arg0, %c0_i32 : i32, i32
  }
  func.func @transform_1(%arg0: i32) -> (i32, i32) {
    %c0_i32 = arith.constant 0 : i32
    %c0_i32_0 = arith.constant 0 : i32
    %c0_i32_1 = arith.constant 0 : i32
    return %c0_i32, %c0_i32_0 : i32, i32
  }
  func.func @transform_2(%arg0: i32) -> (i32, i32) {
    %c0_i32 = arith.constant 0 : i32
    %c0_i32_0 = arith.constant 0 : i32
    %c0_i32_1 = arith.constant 0 : i32
    return %c0_i32, %c0_i32_0 : i32, i32
  }
  func.func @transform_3(%arg0: i32) -> (i32, i32) {
    %c0_i32 = arith.constant 0 : i32
    %c0_i32_0 = arith.constant 0 : i32
    return %arg0, %c0_i32 : i32, i32
  }
}

module attributes {stable_mosaic.version = 11 : i64} {
  func.func @_matmul_bias_act_kernel(%arg0: i32, %arg1: memref<32x512xbf16, #tpu.memory_space<vmem>>, %arg2: memref<512x64xbf16, #tpu.memory_space<vmem>>, %arg3: memref<1x64xf32, #tpu.memory_space<vmem>>, %arg4: memref<32x64xbf16, #tpu.memory_space<vmem>>) attributes {dimension_semantics = [#tpu.dimension_semantics<parallel>], iteration_bounds = array<i64: 1>, scalar_prefetch = 0 : i64, scratch_operands = 0 : i64, tpu.core_type = #tpu.core_type<tc>, window_params = [{transform_indices = @transform_0, window_bounds = array<i64: 32, 512>}, {pipeline_mode = #tpu.pipeline_mode<synchronous>, transform_indices = @transform_1, window_bounds = array<i64: 512, 64>}, {pipeline_mode = #tpu.pipeline_mode<synchronous>, transform_indices = @transform_2, window_bounds = array<i64: 1, 64>}, {transform_indices = @transform_3, window_bounds = array<i64: 32, 64>}]} {
    %c0 = arith.constant 0 : index
    %c0_0 = arith.constant 0 : index
    %0 = vector.load %arg1[%c0, %c0_0] : memref<32x512xbf16, #tpu.memory_space<vmem>>, vector<32x512xbf16>
    %c0_1 = arith.constant 0 : index
    %c0_2 = arith.constant 0 : index
    %1 = vector.load %arg2[%c0_1, %c0_2] : memref<512x64xbf16, #tpu.memory_space<vmem>>, vector<512x64xbf16>
    %cst = arith.constant dense<0.000000e+00> : vector<32x64xf32>
    %2 = tpu.matmul %0, %1, %cst {dimension_numbers = #tpu.dot_dimension_numbers<[1], [0], [0], [1], [0, 0, 1, 1], [], []>} : vector<32x512xbf16>, vector<512x64xbf16>, vector<32x64xf32> -> vector<32x64xf32>
    %c0_3 = arith.constant 0 : index
    %c0_4 = arith.constant 0 : index
    %3 = vector.load %arg3[%c0_3, %c0_4] : memref<1x64xf32, #tpu.memory_space<vmem>>, vector<1x64xf32>
    %4 = vector.broadcast %3 : vector<1x64xf32> to vector<32x64xf32>
    %5 = arith.addf %2, %4 : vector<32x64xf32>
    %cst_5 = arith.constant 0.000000e+00 : f32
    %6 = vector.broadcast %cst_5 : f32 to vector<32x64xf32>
    %7 = arith.maximumf %5, %6 : vector<32x64xf32>
    %8 = arith.truncf %7 : vector<32x64xf32> to vector<32x64xbf16>
    %c0_6 = arith.constant 0 : index
    %c0_7 = arith.constant 0 : index
    %9 = vector.load %arg4[%c0_6, %c0_7] : memref<32x64xbf16, #tpu.memory_space<vmem>>, vector<32x64xbf16>
    tpu.vector_store %arg4[%c0_6, %c0_7], %8 {strides = array<i32>} : memref<32x64xbf16, #tpu.memory_space<vmem>>, vector<32x64xbf16>,
    return
  }
  func.func @transform_0(%arg0: i32) -> (i32, i32) {
    %c0_i32 = arith.constant 0 : i32
    %c0_i32_0 = arith.constant 0 : i32
    return %arg0, %c0_i32 : i32, i32
  }
  func.func @transform_1(%arg0: i32) -> (i32, i32) {
    %c0_i32 = arith.constant 0 : i32
    %c0_i32_0 = arith.constant 0 : i32
    %c0_i32_1 = arith.constant 0 : i32
    return %c0_i32, %c0_i32_0 : i32, i32
  }
  func.func @transform_2(%arg0: i32) -> (i32, i32) {
    %c0_i32 = arith.constant 0 : i32
    %c0_i32_0 = arith.constant 0 : i32
    %c0_i32_1 = arith.constant 0 : i32
    return %c0_i32, %c0_i32_0 : i32, i32
  }
  func.func @transform_3(%arg0: i32) -> (i32, i32) {
    %c0_i32 = arith.constant 0 : i32
    %c0_i32_0 = arith.constant 0 : i32
    return %arg0, %c0_i32 : i32, i32
  }
}

module attributes {stable_mosaic.version = 11 : i64} {
  func.func @_matmul_bias_act_kernel(%arg0: i32, %arg1: memref<8x640xbf16, #tpu.memory_space<vmem>>, %arg2: memref<640x64xbf16, #tpu.memory_space<vmem>>, %arg3: memref<1x64xf32, #tpu.memory_space<vmem>>, %arg4: memref<8x64xbf16, #tpu.memory_space<vmem>>) attributes {dimension_semantics = [#tpu.dimension_semantics<parallel>], iteration_bounds = array<i64: 1>, scalar_prefetch = 0 : i64, scratch_operands = 0 : i64, tpu.core_type = #tpu.core_type<tc>, window_params = [{transform_indices = @transform_0, window_bounds = array<i64: 8, 640>}, {pipeline_mode = #tpu.pipeline_mode<synchronous>, transform_indices = @transform_1, window_bounds = array<i64: 640, 64>}, {pipeline_mode = #tpu.pipeline_mode<synchronous>, transform_indices = @transform_2, window_bounds = array<i64: 1, 64>}, {transform_indices = @transform_3, window_bounds = array<i64: 8, 64>}]} {
    %c0 = arith.constant 0 : index
    %c0_0 = arith.constant 0 : index
    %0 = vector.load %arg1[%c0, %c0_0] : memref<8x640xbf16, #tpu.memory_space<vmem>>, vector<8x640xbf16>
    %c0_1 = arith.constant 0 : index
    %c0_2 = arith.constant 0 : index
    %1 = vector.load %arg2[%c0_1, %c0_2] : memref<640x64xbf16, #tpu.memory_space<vmem>>, vector<640x64xbf16>
    %cst = arith.constant dense<0.000000e+00> : vector<8x64xf32>
    %2 = tpu.matmul %0, %1, %cst {dimension_numbers = #tpu.dot_dimension_numbers<[1], [0], [0], [1], [0, 0, 1, 1], [], []>} : vector<8x640xbf16>, vector<640x64xbf16>, vector<8x64xf32> -> vector<8x64xf32>
    %c0_3 = arith.constant 0 : index
    %c0_4 = arith.constant 0 : index
    %3 = vector.load %arg3[%c0_3, %c0_4] : memref<1x64xf32, #tpu.memory_space<vmem>>, vector<1x64xf32>
    %4 = vector.broadcast %3 : vector<1x64xf32> to vector<8x64xf32>
    %5 = arith.addf %2, %4 : vector<8x64xf32>
    %cst_5 = arith.constant 0.000000e+00 : f32
    %6 = vector.broadcast %cst_5 : f32 to vector<8x64xf32>
    %7 = arith.maximumf %5, %6 : vector<8x64xf32>
    %8 = arith.truncf %7 : vector<8x64xf32> to vector<8x64xbf16>
    %c0_6 = arith.constant 0 : index
    %c0_7 = arith.constant 0 : index
    %9 = vector.load %arg4[%c0_6, %c0_7] : memref<8x64xbf16, #tpu.memory_space<vmem>>, vector<8x64xbf16>
    tpu.vector_store %arg4[%c0_6, %c0_7], %8 {strides = array<i32>} : memref<8x64xbf16, #tpu.memory_space<vmem>>, vector<8x64xbf16>,
    return
  }
  func.func @transform_0(%arg0: i32) -> (i32, i32) {
    %c0_i32 = arith.constant 0 : i32
    %c0_i32_0 = arith.constant 0 : i32
    return %arg0, %c0_i32 : i32, i32
  }
  func.func @transform_1(%arg0: i32) -> (i32, i32) {
    %c0_i32 = arith.constant 0 : i32
    %c0_i32_0 = arith.constant 0 : i32
    %c0_i32_1 = arith.constant 0 : i32
    return %c0_i32, %c0_i32_0 : i32, i32
  }
  func.func @transform_2(%arg0: i32) -> (i32, i32) {
    %c0_i32 = arith.constant 0 : i32
    %c0_i32_0 = arith.constant 0 : i32
    %c0_i32_1 = arith.constant 0 : i32
    return %c0_i32, %c0_i32_0 : i32, i32
  }
  func.func @transform_3(%arg0: i32) -> (i32, i32) {
    %c0_i32 = arith.constant 0 : i32
    %c0_i32_0 = arith.constant 0 : i32
    return %arg0, %c0_i32 : i32, i32
  }
}

module attributes {stable_mosaic.version = 11 : i64} {
  func.func @_fc_head_kernel(%arg0: i32, %arg1: memref<2x256xbf16, #tpu.memory_space<vmem>>, %arg2: memref<256x512xbf16, #tpu.memory_space<vmem>>, %arg3: memref<1x512xf32, #tpu.memory_space<vmem>>, %arg4: memref<512x4xbf16, #tpu.memory_space<vmem>>, %arg5: memref<1x4xf32, #tpu.memory_space<vmem>>, %arg6: memref<2x4xf32, #tpu.memory_space<vmem>>) attributes {dimension_semantics = [#tpu.dimension_semantics<parallel>], iteration_bounds = array<i64: 1>, scalar_prefetch = 0 : i64, scratch_operands = 0 : i64, tpu.core_type = #tpu.core_type<tc>, window_params = [{transform_indices = @transform_0, window_bounds = array<i64: 2, 256>}, {pipeline_mode = #tpu.pipeline_mode<synchronous>, transform_indices = @transform_1, window_bounds = array<i64: 256, 512>}, {pipeline_mode = #tpu.pipeline_mode<synchronous>, transform_indices = @transform_2, window_bounds = array<i64: 1, 512>}, {pipeline_mode = #tpu.pipeline_mode<synchronous>, transform_indices = @transform_3, window_bounds = array<i64: 512, 4>}, {pipeline_mode = #tpu.pipeline_mode<synchronous>, transform_indices = @transform_4, window_bounds = array<i64: 1, 4>}, {transform_indices = @transform_5, window_bounds = array<i64: 2, 4>}]} {
    %c0 = arith.constant 0 : index
    %c0_0 = arith.constant 0 : index
    %0 = vector.load %arg1[%c0, %c0_0] : memref<2x256xbf16, #tpu.memory_space<vmem>>, vector<2x256xbf16>
    %c0_1 = arith.constant 0 : index
    %c0_2 = arith.constant 0 : index
    %1 = vector.load %arg2[%c0_1, %c0_2] : memref<256x512xbf16, #tpu.memory_space<vmem>>, vector<256x512xbf16>
    %cst = arith.constant dense<0.000000e+00> : vector<2x512xf32>
    %2 = tpu.matmul %0, %1, %cst {dimension_numbers = #tpu.dot_dimension_numbers<[1], [0], [0], [1], [0, 0, 1, 1], [], []>} : vector<2x256xbf16>, vector<256x512xbf16>, vector<2x512xf32> -> vector<2x512xf32>
    %c0_3 = arith.constant 0 : index
    %c0_4 = arith.constant 0 : index
    %3 = vector.load %arg3[%c0_3, %c0_4] : memref<1x512xf32, #tpu.memory_space<vmem>>, vector<1x512xf32>
    %4 = vector.broadcast %3 : vector<1x512xf32> to vector<2x512xf32>
    %5 = arith.addf %2, %4 : vector<2x512xf32>
    %cst_5 = arith.constant 0.000000e+00 : f32
    %6 = vector.broadcast %cst_5 : f32 to vector<2x512xf32>
    %7 = arith.maximumf %5, %6 : vector<2x512xf32>
    %8 = arith.truncf %7 : vector<2x512xf32> to vector<2x512xbf16>
    %c0_6 = arith.constant 0 : index
    %c0_7 = arith.constant 0 : index
    %9 = vector.load %arg4[%c0_6, %c0_7] : memref<512x4xbf16, #tpu.memory_space<vmem>>, vector<512x4xbf16>
    %cst_8 = arith.constant dense<0.000000e+00> : vector<2x4xf32>
    %10 = tpu.matmul %8, %9, %cst_8 {dimension_numbers = #tpu.dot_dimension_numbers<[1], [0], [0], [1], [0, 0, 1, 1], [], []>} : vector<2x512xbf16>, vector<512x4xbf16>, vector<2x4xf32> -> vector<2x4xf32>
    %c0_9 = arith.constant 0 : index
    %c0_10 = arith.constant 0 : index
    %11 = vector.load %arg5[%c0_9, %c0_10] : memref<1x4xf32, #tpu.memory_space<vmem>>, vector<1x4xf32>
    %12 = vector.broadcast %11 : vector<1x4xf32> to vector<2x4xf32>
    %13 = arith.addf %10, %12 : vector<2x4xf32>
    %c0_11 = arith.constant 0 : index
    %c0_12 = arith.constant 0 : index
    %14 = vector.load %arg6[%c0_11, %c0_12] : memref<2x4xf32, #tpu.memory_space<vmem>>, vector<2x4xf32>
    tpu.vector_store %arg6[%c0_11, %c0_12], %13 {strides = array<i32>} : memref<2x4xf32, #tpu.memory_space<vmem>>, vector<2x4xf32>,
    return
  }
  func.func @transform_0(%arg0: i32) -> (i32, i32) {
    %c0_i32 = arith.constant 0 : i32
    %c0_i32_0 = arith.constant 0 : i32
    return %arg0, %c0_i32 : i32, i32
  }
  func.func @transform_1(%arg0: i32) -> (i32, i32) {
    %c0_i32 = arith.constant 0 : i32
    %c0_i32_0 = arith.constant 0 : i32
    %c0_i32_1 = arith.constant 0 : i32
    return %c0_i32, %c0_i32_0 : i32, i32
  }
  func.func @transform_2(%arg0: i32) -> (i32, i32) {
    %c0_i32 = arith.constant 0 : i32
    %c0_i32_0 = arith.constant 0 : i32
    %c0_i32_1 = arith.constant 0 : i32
    return %c0_i32, %c0_i32_0 : i32, i32
  }
  func.func @transform_3(%arg0: i32) -> (i32, i32) {
    %c0_i32 = arith.constant 0 : i32
    %c0_i32_0 = arith.constant 0 : i32
    %c0_i32_1 = arith.constant 0 : i32
    return %c0_i32, %c0_i32_0 : i32, i32
  }
  func.func @transform_4(%arg0: i32) -> (i32, i32) {
    %c0_i32 = arith.constant 0 : i32
    %c0_i32_0 = arith.constant 0 : i32
    %c0_i32_1 = arith.constant 0 : i32
    return %c0_i32, %c0_i32_0 : i32, i32
  }
  func.func @transform_5(%arg0: i32) -> (i32, i32) {
    %c0_i32 = arith.constant 0 : i32
    %c0_i32_0 = arith.constant 0 : i32
    return %arg0, %c0_i32 : i32, i32
  }
}

</mosaic_0001>

<bundles_post_ra>
// kernel: dqn_forward.4
= control target key start
LH: loop header
LB: loop body
LE: loop exit
PB: predicated region body
PF: predicated region fallthrough
CT: control target
= control target key end

     0   :  { %vm564_vm0 = vcmask 257024   ;;  %s1124_s1 = inlined_call_operand.vmem [shape: bf16[256,32], index: 1, kind: input, shape index: {}]   ;;  %s1125_s0 = inlined_call_operand.vmem [shape: bf16[200,256], index: 0, kind: input, shape index: {}]   ;;  %s1126_s2 = inlined_call_operand.vmem [shape: f32[1,32], index: 2, kind: input, shape index: {}]   ;;  %s1127_s3 = inlined_call_operand.vmem [shape: bf16[200,32], index: 3, kind: output, shape index: {}]  }
   0x1   :  { %v797_v0 = vld [vmem:[%s1124_s1 + $0x40] sm:$0xff]   ;;  %v799_v2 = vld [vmem:[%s1124_s1 + $0x48] sm:$0xff]   ;;  %v801_v4 = vld [vmem:[%s1124_s1 + $0x50] sm:$0xff]  }
   0x2   :  { %v798_v1 = vld [vmem:[%s1124_s1] sm:$0xff]   ;;  %687 = vmatprep.subr.bf16.mxu0 %v797_v0  ;;  %781 = vmatprep.subr.bf16.mxu1 %v797_v0  ;;  %v800_v3 = vld [vmem:[%s1124_s1 + $0x8] sm:$0xff]   ;;  %v802_v5 = vld [vmem:[%s1124_s1 + $0x10] sm:$0xff]  }
   0x3   :  { %688 = vmatpush3.bf16.msra.mxu0 %v798_v1  ;;  %789 = vmatpush3.bf16.msra.mxu1 %v798_v1  ;;  %v803_v6 = vld [vmem:[%s1124_s1 + $0x58] sm:$0xff]   ;;  %v805_v8 = vld [vmem:[%s1124_s1 + $0x60] sm:$0xff]   ;;  %v807_v10 = vld [vmem:[%s1124_s1 + $0x68] sm:$0xff]  }
   0x4   :  { %689 = vmatprep.subr.bf16.mxu0 %v799_v2  ;;  %782 = vmatprep.subr.bf16.mxu1 %v799_v2  ;;  %v804_v7 = vld [vmem:[%s1124_s1 + $0x18] sm:$0xff]   ;;  %v806_v9 = vld [vmem:[%s1124_s1 + $0x20] sm:$0xff]   ;;  %v808_v13 = vld [vmem:[%s1124_s1 + $0x28] sm:$0xff]  }
   0x5   :  { %v815_v11 = vld [vmem:[%s1125_s0 + $0x4] ss:$8 sps:$4 sm:$0xff]   ;;  %v818_v12 = vld [vmem:[%s1125_s0 + $0x74] ss:$8 sps:$4 sm:$0xff]   ;;  %v813_v18 = vld [vmem:[%s1125_s0] ss:$8 sps:$4 sm:$0xff]  }
   0x6   :  { %v809_v14 = vld [vmem:[%s1124_s1 + $0x70] sm:$0xff]   ;;  %334 = vmatprep.mubr.bf16.mxu0 %v815_v11  ;;  %390 = vmatprep.mubr.bf16.mxu1 %v818_v12  ;;  %v811_v16 = vld [vmem:[%s1124_s1 + $0x78] sm:$0xff]   ;;  %v822_v21 = vld [vmem:[%s1125_s0 + $0x84] ss:$8 sps:$4 sm:$0xff]  }
   0x7   :  { %690 = vmatpush3.bf16.msra.mxu0 %v800_v3  ;;  %790 = vmatpush3.bf16.msra.mxu1 %v800_v3  ;;  %v810_v15 = vld [vmem:[%s1124_s1 + $0x30] sm:$0xff]   ;;  %v812_v17 = vld [vmem:[%s1124_s1 + $0x38] sm:$0xff]   ;;  %v826_v23 = vld [vmem:[%s1125_s0 + $0x80] ss:$8 sps:$4 sm:$0xff]  }
   0x8   :  { %691 = vmatprep.subr.bf16.mxu0 %v801_v4  ;;  %783 = vmatprep.subr.bf16.mxu1 %v801_v4  ;;  %v816_v19 = vld [vmem:[%s1125_s0 + $0x70] ss:$8 sps:$4 sm:$0xff]   ;;  %v819_v20 = vld [vmem:[%s1125_s0 + $0x14] ss:$8 sps:$4 sm:$0xff]   ;;  %v824_v24 = vld [vmem:[%s1125_s0 + $0x24] ss:$8 sps:$4 sm:$0xff]  }
   0x9   :  { %v821_v22 = vld [vmem:[%s1125_s0 + $0x10] ss:$8 sps:$4 sm:$0xff]   ;;  %v828_v25 = vld [vmem:[%s1125_s0 + $0x94] ss:$8 sps:$4 sm:$0xff]   ;;  %v827_v26 = vld [vmem:[%s1125_s0 + $0x20] ss:$8 sps:$4 sm:$0xff]  }
   0xa   :  { %v832_v27 = vld [vmem:[%s1125_s0 + $0x90] ss:$8 sps:$4 sm:$0xff]   ;;  %v830_v28 = vld [vmem:[%s1125_s0 + $0x34] ss:$8 sps:$4 sm:$0xff]   ;;  %v834_v29 = vld [vmem:[%s1125_s0 + $0xa4] ss:$8 sps:$4 sm:$0xff]  }
   0xb   :  { %692 = vmatpush3.bf16.msra.mxu0 %v802_v5  ;;  %791 = vmatpush3.bf16.msra.mxu1 %v802_v5  ;;  %v833_v30 = vld [vmem:[%s1125_s0 + $0x30] ss:$8 sps:$4 sm:$0xff]   ;;  %v838_v31 = vld [vmem:[%s1125_s0 + $0xa0] ss:$8 sps:$4 sm:$0xff]   ;;  %v836_v32 = vld [vmem:[%s1125_s0 + $0x44] ss:$8 sps:$4 sm:$0xff]  }
   0xc   :  { %693 = vmatprep.subr.bf16.mxu0 %v803_v6  ;;  %784 = vmatprep.subr.bf16.mxu1 %v803_v6  ;;  %v840_v33 = vld [vmem:[%s1125_s0 + $0xb4] ss:$8 sps:$4 sm:$0xff]   ;;  %v39_v34 = vld [vmem:[%s1125_s0 + $0xc0] sm:$0xff]  ;;  %v844_v36 = vld [vmem:[%s1125_s0 + $0xb0] ss:$8 sps:$4 sm:$0xff]  }
   0xd   :  { %v839_v35 = vld [vmem:[%s1125_s0 + $0x40] ss:$8 sps:$4 sm:$0xff]   ;;  %v842_v37 = vld [vmem:[%s1125_s0 + $0x54] ss:$8 sps:$4 sm:$0xff]   ;;  %v620_v38 = vcombine.high %v39_v34, %v39_v34  ;;  %v845_v39 = vld [vmem:[%s1125_s0 + $0x50] ss:$8 sps:$4 sm:$0xff]   ;;  %v619_v40 = vcombine.low %v39_v34, %v39_v34 }
   0xe   :  { %v847_v41 = vld [vmem:[%s1125_s0 + $0x64] ss:$8 sps:$4 sm:$0xff]   ;;  %v850_v42 = vld [vmem:[%s1125_s0 + $0x60] ss:$8 sps:$4 sm:$0xff]  }
   0xf   :  { %694 = vmatpush3.bf16.msra.mxu0 %v804_v7  ;;  %792 = vmatpush3.bf16.msra.mxu1 %v804_v7  ;;  %v997_v45 = vld [vmem:[%s1126_s2] ss:$0 sm:$0xff] }
  0x10   :  { %695 = vmatprep.subr.bf16.mxu0 %v805_v8  ;;  %785 = vmatprep.subr.bf16.mxu1 %v805_v8 }
  0x13   :  { %696 = vmatpush3.bf16.msra.mxu0 %v806_v9  ;;  %793 = vmatpush3.bf16.msra.mxu1 %v806_v9 }
  0x14   :  { %697 = vmatprep.subr.bf16.mxu0 %v807_v10  ;;  %786 = vmatprep.subr.bf16.mxu1 %v807_v10 }
  0x17   :  { %698 = vmatpush3.bf16.msra.mxu0 %v808_v13  ;;  %794 = vmatpush3.bf16.msra.mxu1 %v808_v13 }
  0x18   :  { %699 = vmatprep.subr.bf16.mxu0 %v809_v14  ;;  %787 = vmatprep.subr.bf16.mxu1 %v809_v14 }
  0x1b   :  { %700 = vmatpush3.bf16.msra.mxu0 %v810_v15  ;;  %795 = vmatpush3.bf16.msra.mxu1 %v810_v15 }
  0x1c   :  { %701 = vmatprep.subr.bf16.mxu0 %v811_v16  ;;  %788 = vmatprep.subr.bf16.mxu1 %v811_v16 }
  0x1f   :  { %702 = vmatpush3.bf16.msra.mxu0 %v812_v17  ;;  %796 = vmatpush3.bf16.msra.mxu1 %v812_v17 }
  0x22   :  { %335 = vmatmul.mubr.bf16.vlgmr.msra.gmra.mrb[0].mxu0 %v813_v18  ;;  %391 = vmatmul.mubr.bf16.vlgmr.msra.gmra.mrb[0].mxu1 %v816_v19 }
  0x23   :  { %342 = vmatprep.mubr.bf16.mxu0 %v819_v20  ;;  %398 = vmatprep.mubr.bf16.mxu1 %v822_v21 }
  0x2a   :  { %343 = vmatmul.mubr.bf16.gmra.mrb[4].mxu0 %v821_v22  ;;  %399 = vmatmul.mubr.bf16.gmra.mrb[4].mxu1 %v826_v23 }
  0x2b   :  { %350 = vmatprep.mubr.bf16.mxu0 %v824_v24  ;;  %406 = vmatprep.mubr.bf16.mxu1 %v828_v25 }
  0x32   :  { %351 = vmatmul.mubr.bf16.gmra.mrb[8].mxu0 %v827_v26  ;;  %407 = vmatmul.mubr.bf16.gmra.mrb[8].mxu1 %v832_v27 }
  0x33   :  { %358 = vmatprep.mubr.bf16.mxu0 %v830_v28  ;;  %414 = vmatprep.mubr.bf16.mxu1 %v834_v29 }
  0x3a   :  { %359 = vmatmul.mubr.bf16.gmra.mrb[12].mxu0 %v833_v30  ;;  %415 = vmatmul.mubr.bf16.gmra.mrb[12].mxu1 %v838_v31 }
  0x3b   :  { %366 = vmatprep.mubr.bf16.mxu0 %v836_v32  ;;  %422 = vmatprep.mubr.bf16.mxu1 %v840_v33 }
  0x42   :  { %367 = vmatmul.mubr.bf16.gmra.mrb[16].mxu0 %v839_v35  ;;  %423 = vmatmul.mubr.bf16.gmra.mrb[16].mxu1 %v844_v36 }
  0x43   :  { %374 = vmatprep.mubr.bf16.mxu0 %v842_v37  ;;  %430 = vmatprep.mubr.bf16.mxu1 %v620_v38 }
  0x4a   :  { %375 = vmatmul.mubr.bf16.gmra.mrb[20].mxu0 %v845_v39  ;;  %431 = vmatmul.mubr.bf16.gmra.mrb[20].mxu1 %v619_v40 }
  0x4b   :  { %382 = vmatprep.mubr.bf16.mxu0 %v847_v41 }
  0x52   :  { %383 = vmatmul.mubr.bf16.gmra.mrb[24].mxu0 %v850_v42 }
  0xf5   :  { %v703_v43 = vpop.f32.mrb[0].mxu0  ;;  %v745_v44 = vpop.f32.mrb[0].mxu1 }
  0xf6   :  { %v704_v46 = vpop.f32.mrb[1].mxu0  ;;  %v746_v47 = vpop.f32.mrb[1].mxu1 }
  0xf7   :  { %v705_v48 = vadd.f32 %v704_v46, %v703_v43  ;;  %v706_v49 = vpop.f32.mrb[2].mxu0  ;;  %v747_v50 = vadd.f32 %v746_v47, %v745_v44  ;;  %v748_v51 = vpop.f32.mrb[2].mxu1 }
  0xf8   :  { %v707_v52 = vpop.f32.mrb[3].mxu0  ;;  %v749_v53 = vpop.f32.mrb[3].mxu1 }
  0xf9   :  { %v337_v54 = vadd.f32 %v705_v48, %v997_v45  ;;  %v708_v55 = vadd.f32 %v707_v52, %v706_v49  ;;  %v393_v56 = vadd.f32 %v747_v50, %v997_v45  ;;  %v750_v57 = vadd.f32 %v749_v53, %v748_v51 }
  0xfb   :  { %v438_v58 = vmax.f32 %v337_v54, 0.0  ;;  %v340_v59 = vadd.f32 %v708_v55, %v997_v45  ;;  %v452_v60 = vmax.f32 %v393_v56, 0.0  ;;  %v396_v61 = vadd.f32 %v750_v57, %v997_v45 }
  0xfd   :  { %v662_v62 = vpack.c.bf16 %v438_v58, %v438_v58  ;;  %v439_v63 = vmax.f32 %v340_v59, 0.0  ;;  %v709_v0 = vpop.f32.mrb[4].mxu0  ;;  %v676_v1 = vpack.c.bf16 %v452_v60, %v452_v60  ;;  %v453_v2 = vmax.f32 %v396_v61, 0.0  ;;  %v751_v3 = vpop.f32.mrb[4].mxu1 }
  0xfe   :  { %v710_v4 = vpop.f32.mrb[5].mxu0  ;;  %v752_v5 = vpop.f32.mrb[5].mxu1 }
  0xff   :  { %565 = vst.msk [vmem:[%s1127_s3] sm:$0xf] %vm564_vm0, %v662_v62  ;;  %v663_v6 = vpack.c.bf16 %v439_v63, %v439_v63  ;;  %579 = vst.msk [vmem:[%s1127_s3 + $0x38] sm:$0xf] %vm564_vm0, %v676_v1  ;;  %v711_v7 = vadd.f32 %v710_v4, %v709_v0  ;;  %v712_v8 = vpop.f32.mrb[6].mxu0  ;;  %v677_v9 = vpack.c.bf16 %v453_v2, %v453_v2  ;;  %v754_v11 = vpop.f32.mrb[6].mxu1 }
 0x100   :  { %v753_v10 = vadd.f32 %v752_v5, %v751_v3  ;;  %v713_v12 = vpop.f32.mrb[7].mxu0  ;;  %v755_v13 = vpop.f32.mrb[7].mxu1 }
 0x101   :  { %566 = vst.msk [vmem:[%s1127_s3 + $0x4] sm:$0xf] %vm564_vm0, %v663_v6  ;;  %v345_v14 = vadd.f32 %v711_v7, %v997_v45  ;;  %580 = vst.msk [vmem:[%s1127_s3 + $0x3c] sm:$0xf] %vm564_vm0, %v677_v9  ;;  %v714_v15 = vadd.f32 %v713_v12, %v712_v8  ;;  %v756_v17 = vadd.f32 %v755_v13, %v754_v11 }
 0x102   :  { %v401_v16 = vadd.f32 %v753_v10, %v997_v45 }
 0x103   :  { %v440_v18 = vmax.f32 %v345_v14, 0.0  ;;  %v348_v19 = vadd.f32 %v714_v15, %v997_v45  ;;  %v404_v21 = vadd.f32 %v756_v17, %v997_v45 }
 0x104   :  { %v454_v20 = vmax.f32 %v401_v16, 0.0 }
 0x105   :  { %v664_v22 = vpack.c.bf16 %v440_v18, %v440_v18  ;;  %v441_v23 = vmax.f32 %v348_v19, 0.0  ;;  %v715_v24 = vpop.f32.mrb[8].mxu0  ;;  %v455_v26 = vmax.f32 %v404_v21, 0.0  ;;  %v757_v27 = vpop.f32.mrb[8].mxu1 }
 0x106   :  { %v678_v25 = vpack.c.bf16 %v454_v20, %v454_v20  ;;  %v716_v28 = vpop.f32.mrb[9].mxu0  ;;  %v758_v29 = vpop.f32.mrb[9].mxu1 }
 0x107   :  { %567 = vst.msk [vmem:[%s1127_s3 + $0x8] sm:$0xf] %vm564_vm0, %v664_v22  ;;  %v665_v30 = vpack.c.bf16 %v441_v23, %v441_v23  ;;  %v717_v31 = vadd.f32 %v716_v28, %v715_v24  ;;  %v718_v32 = vpop.f32.mrb[10].mxu0  ;;  %v679_v33 = vpack.c.bf16 %v455_v26, %v455_v26  ;;  %v759_v34 = vadd.f32 %v758_v29, %v757_v27  ;;  %v760_v35 = vpop.f32.mrb[10].mxu1 }
 0x108   :  { %581 = vst.msk [vmem:[%s1127_s3 + $0x40] sm:$0xf] %vm564_vm0, %v678_v25  ;;  %v719_v36 = vpop.f32.mrb[11].mxu0  ;;  %v761_v37 = vpop.f32.mrb[11].mxu1 }
 0x109   :  { %568 = vst.msk [vmem:[%s1127_s3 + $0xc] sm:$0xf] %vm564_vm0, %v665_v30  ;;  %v353_v38 = vadd.f32 %v717_v31, %v997_v45  ;;  %582 = vst.msk [vmem:[%s1127_s3 + $0x44] sm:$0xf] %vm564_vm0, %v679_v33  ;;  %v720_v39 = vadd.f32 %v719_v36, %v718_v32  ;;  %v409_v40 = vadd.f32 %v759_v34, %v997_v45 }
 0x10a   :  { %v762_v41 = vadd.f32 %v761_v37, %v760_v35 }
 0x10b   :  { %v442_v42 = vmax.f32 %v353_v38, 0.0  ;;  %v356_v43 = vadd.f32 %v720_v39, %v997_v45  ;;  %v456_v44 = vmax.f32 %v409_v40, 0.0 }
 0x10c   :  { %v412_v46 = vadd.f32 %v762_v41, %v997_v45 }
 0x10d   :  { %v666_v47 = vpack.c.bf16 %v442_v42, %v442_v42  ;;  %v443_v48 = vmax.f32 %v356_v43, 0.0  ;;  %v721_v49 = vpop.f32.mrb[12].mxu0  ;;  %v680_v50 = vpack.c.bf16 %v456_v44, %v456_v44  ;;  %v763_v52 = vpop.f32.mrb[12].mxu1 }
 0x10e   :  { %v457_v51 = vmax.f32 %v412_v46, 0.0  ;;  %v722_v53 = vpop.f32.mrb[13].mxu0  ;;  %v764_v54 = vpop.f32.mrb[13].mxu1 }
 0x10f   :  { %569 = vst.msk [vmem:[%s1127_s3 + $0x10] sm:$0xf] %vm564_vm0, %v666_v47  ;;  %v667_v55 = vpack.c.bf16 %v443_v48, %v443_v48  ;;  %583 = vst.msk [vmem:[%s1127_s3 + $0x48] sm:$0xf] %vm564_vm0, %v680_v50  ;;  %v723_v56 = vadd.f32 %v722_v53, %v721_v49  ;;  %v724_v57 = vpop.f32.mrb[14].mxu0  ;;  %v765_v59 = vadd.f32 %v764_v54, %v763_v52  ;;  %v766_v60 = vpop.f32.mrb[14].mxu1 }
 0x110   :  { %v681_v58 = vpack.c.bf16 %v457_v51, %v457_v51  ;;  %v725_v61 = vpop.f32.mrb[15].mxu0  ;;  %v767_v62 = vpop.f32.mrb[15].mxu1 }
 0x111   :  { %570 = vst.msk [vmem:[%s1127_s3 + $0x14] sm:$0xf] %vm564_vm0, %v667_v55  ;;  %v361_v63 = vadd.f32 %v723_v56, %v997_v45  ;;  %v726_v0 = vadd.f32 %v725_v61, %v724_v57  ;;  %v417_v1 = vadd.f32 %v765_v59, %v997_v45  ;;  %v768_v2 = vadd.f32 %v767_v62, %v766_v60 }
 0x112   :  { %584 = vst.msk [vmem:[%s1127_s3 + $0x4c] sm:$0xf] %vm564_vm0, %v681_v58 }
 0x113   :  { %v444_v3 = vmax.f32 %v361_v63, 0.0  ;;  %v364_v4 = vadd.f32 %v726_v0, %v997_v45  ;;  %v458_v5 = vmax.f32 %v417_v1, 0.0  ;;  %v420_v6 = vadd.f32 %v768_v2, %v997_v45 }
 0x115   :  { %v668_v7 = vpack.c.bf16 %v444_v3, %v444_v3  ;;  %v445_v8 = vmax.f32 %v364_v4, 0.0  ;;  %v727_v9 = vpop.f32.mrb[16].mxu0  ;;  %v682_v10 = vpack.c.bf16 %v458_v5, %v458_v5  ;;  %v459_v11 = vmax.f32 %v420_v6, 0.0  ;;  %v769_v12 = vpop.f32.mrb[16].mxu1 }
 0x116   :  { %v728_v13 = vpop.f32.mrb[17].mxu0  ;;  %v770_v14 = vpop.f32.mrb[17].mxu1 }
 0x117   :  { %571 = vst.msk [vmem:[%s1127_s3 + $0x18] sm:$0xf] %vm564_vm0, %v668_v7  ;;  %v669_v15 = vpack.c.bf16 %v445_v8, %v445_v8  ;;  %585 = vst.msk [vmem:[%s1127_s3 + $0x50] sm:$0xf] %vm564_vm0, %v682_v10  ;;  %v729_v16 = vadd.f32 %v728_v13, %v727_v9  ;;  %v730_v17 = vpop.f32.mrb[18].mxu0  ;;  %v683_v18 = vpack.c.bf16 %v459_v11, %v459_v11  ;;  %v772_v20 = vpop.f32.mrb[18].mxu1 }
 0x118   :  { %v771_v19 = vadd.f32 %v770_v14, %v769_v12  ;;  %v731_v21 = vpop.f32.mrb[19].mxu0  ;;  %v773_v22 = vpop.f32.mrb[19].mxu1 }
 0x119   :  { %572 = vst.msk [vmem:[%s1127_s3 + $0x1c] sm:$0xf] %vm564_vm0, %v669_v15  ;;  %v369_v23 = vadd.f32 %v729_v16, %v997_v45  ;;  %586 = vst.msk [vmem:[%s1127_s3 + $0x54] sm:$0xf] %vm564_vm0, %v683_v18  ;;  %v732_v24 = vadd.f32 %v731_v21, %v730_v17  ;;  %v774_v26 = vadd.f32 %v773_v22, %v772_v20 }
 0x11a   :  { %v425_v25 = vadd.f32 %v771_v19, %v997_v45 }
 0x11b   :  { %v446_v27 = vmax.f32 %v369_v23, 0.0  ;;  %v372_v28 = vadd.f32 %v732_v24, %v997_v45  ;;  %v428_v30 = vadd.f32 %v774_v26, %v997_v45 }
 0x11c   :  { %v460_v29 = vmax.f32 %v425_v25, 0.0 }
 0x11d   :  { %v670_v31 = vpack.c.bf16 %v446_v27, %v446_v27  ;;  %v447_v32 = vmax.f32 %v372_v28, 0.0  ;;  %v733_v33 = vpop.f32.mrb[20].mxu0  ;;  %v461_v35 = vmax.f32 %v428_v30, 0.0  ;;  %v775_v36 = vpop.f32.mrb[20].mxu1 }
 0x11e   :  { %v684_v34 = vpack.c.bf16 %v460_v29, %v460_v29  ;;  %v734_v37 = vpop.f32.mrb[21].mxu0  ;;  %v776_v38 = vpop.f32.mrb[21].mxu1 }
 0x11f   :  { %573 = vst.msk [vmem:[%s1127_s3 + $0x20] sm:$0xf] %vm564_vm0, %v670_v31  ;;  %v671_v39 = vpack.c.bf16 %v447_v32, %v447_v32  ;;  %v735_v40 = vadd.f32 %v734_v37, %v733_v33  ;;  %v736_v41 = vpop.f32.mrb[22].mxu0  ;;  %v685_v42 = vpack.c.bf16 %v461_v35, %v461_v35  ;;  %v777_v43 = vadd.f32 %v776_v38, %v775_v36  ;;  %v778_v44 = vpop.f32.mrb[22].mxu1 }
 0x120   :  { %587 = vst.msk [vmem:[%s1127_s3 + $0x58] sm:$0xf] %vm564_vm0, %v684_v34  ;;  %v737_v46 = vpop.f32.mrb[23].mxu0  ;;  %v779_v47 = vpop.f32.mrb[23].mxu1 }
 0x121   :  { %574 = vst.msk [vmem:[%s1127_s3 + $0x24] sm:$0xf] %vm564_vm0, %v671_v39  ;;  %v377_v48 = vadd.f32 %v735_v40, %v997_v45  ;;  %588 = vst.msk [vmem:[%s1127_s3 + $0x5c] sm:$0xf] %vm564_vm0, %v685_v42  ;;  %v738_v49 = vadd.f32 %v737_v46, %v736_v41  ;;  %v433_v50 = vadd.f32 %v777_v43, %v997_v45 }
 0x123   :  { %v448_v51 = vmax.f32 %v377_v48, 0.0  ;;  %v380_v52 = vadd.f32 %v738_v49, %v997_v45  ;;  %v462_v53 = vmax.f32 %v433_v50, 0.0 }
 0x125   :  { %v672_v54 = vpack.c.bf16 %v448_v51, %v448_v51  ;;  %v449_v55 = vmax.f32 %v380_v52, 0.0  ;;  %v739_v56 = vpop.f32.mrb[24].mxu0  ;;  %v686_v57 = vpack.c.bf16 %v462_v53, %v462_v53 }
 0x126   :  { %v740_v58 = vpop.f32.mrb[25].mxu0 }
 0x127   :  { %575 = vst.msk [vmem:[%s1127_s3 + $0x28] sm:$0xf] %vm564_vm0, %v672_v54  ;;  %v673_v59 = vpack.c.bf16 %v449_v55, %v449_v55  ;;  %589 = vst.msk [vmem:[%s1127_s3 + $0x60] sm:$0xf] %vm564_vm0, %v686_v57  ;;  %v741_v60 = vadd.f32 %v740_v58, %v739_v56  ;;  %v742_v61 = vpop.f32.mrb[26].mxu0 }
 0x128   :  { %v743_v62 = vpop.f32.mrb[27].mxu0 }
 0x129   :  { %576 = vst.msk [vmem:[%s1127_s3 + $0x2c] sm:$0xf] %vm564_vm0, %v673_v59  ;;  %v385_v63 = vadd.f32 %v741_v60, %v997_v45  ;;  %v744_v0 = vadd.f32 %v743_v62, %v742_v61 }
 0x12b   :  { %v450_v1 = vmax.f32 %v385_v63, 0.0  ;;  %v388_v2 = vadd.f32 %v744_v0, %v997_v45 }
 0x12d   :  { %v674_v3 = vpack.c.bf16 %v450_v1, %v450_v1  ;;  %v451_v4 = vmax.f32 %v388_v2, 0.0 }
 0x12f   :  { %577 = vst.msk [vmem:[%s1127_s3 + $0x30] sm:$0xf] %vm564_vm0, %v674_v3  ;;  %v675_v5 = vpack.c.bf16 %v451_v4, %v451_v4 }
 0x131   :  { %578 = vst.msk [vmem:[%s1127_s3 + $0x34] sm:$0xf] %vm564_vm0, %v675_v5 }

// kernel: dqn_forward.5
= control target key start
LH: loop header
LB: loop body
LE: loop exit
PB: predicated region body
PF: predicated region fallthrough
CT: control target
= control target key end

     0   :  { %vm444_vm0 = vcmask 519168   ;;  %s761_s1 = inlined_call_operand.vmem [shape: bf16[512,64], index: 1, kind: input, shape index: {}]   ;;  %s762_s0 = inlined_call_operand.vmem [shape: bf16[32,512], index: 0, kind: input, shape index: {}]   ;;  %s763_s2 = inlined_call_operand.vmem [shape: f32[1,64], index: 2, kind: input, shape index: {}]   ;;  %s764_s3 = inlined_call_operand.vmem [shape: bf16[32,64], index: 3, kind: output, shape index: {}]  }
   0x1   :  { %v558_v0 = vld [vmem:[%s761_s1 + $0x40] sm:$0xff]   ;;  %v562_v4 = vld [vmem:[%s761_s1 + $0x48] sm:$0xff]   ;;  %v566_v8 = vld [vmem:[%s761_s1 + $0x50] sm:$0xff]  }
   0x2   :  { %v559_v1 = vld [vmem:[%s761_s1 + $0xc0] sm:$0xff]   ;;  %502 = vmatprep.subr.bf16.mxu0 %v558_v0  ;;  %v563_v5 = vld [vmem:[%s761_s1 + $0xc8] sm:$0xff]   ;;  %v567_v9 = vld [vmem:[%s761_s1 + $0xd0] sm:$0xff]  }
   0x3   :  { %v560_v2 = vld [vmem:[%s761_s1] sm:$0xff]   ;;  %530 = vmatprep.subr.bf16.mxu1 %v559_v1  ;;  %v564_v6 = vld [vmem:[%s761_s1 + $0x8] sm:$0xff]   ;;  %v568_v10 = vld [vmem:[%s761_s1 + $0x10] sm:$0xff]  }
   0x4   :  { %v561_v3 = vld [vmem:[%s761_s1 + $0x80] sm:$0xff]   ;;  %503 = vmatpush3.bf16.msra.mxu0 %v560_v2  ;;  %v565_v7 = vld [vmem:[%s761_s1 + $0x88] sm:$0xff]   ;;  %v569_v11 = vld [vmem:[%s761_s1 + $0x90] sm:$0xff]  }
   0x5   :  { %531 = vmatpush3.bf16.msra.mxu1 %v561_v3  ;;  %504 = vmatprep.subr.bf16.mxu0 %v562_v4  ;;  %v570_v12 = vld [vmem:[%s761_s1 + $0x58] sm:$0xff]   ;;  %v574_v16 = vld [vmem:[%s761_s1 + $0x60] sm:$0xff]   ;;  %v578_v20 = vld [vmem:[%s761_s1 + $0x68] sm:$0xff]  }
   0x6   :  { %532 = vmatprep.subr.bf16.mxu1 %v563_v5  ;;  %v571_v13 = vld [vmem:[%s761_s1 + $0xd8] sm:$0xff]   ;;  %v575_v17 = vld [vmem:[%s761_s1 + $0xe0] sm:$0xff]   ;;  %v579_v21 = vld [vmem:[%s761_s1 + $0xe8] sm:$0xff]  }
   0x7   :  { %v572_v14 = vld [vmem:[%s761_s1 + $0x18] sm:$0xff]   ;;  %v576_v18 = vld [vmem:[%s761_s1 + $0x20] sm:$0xff]   ;;  %v580_v22 = vld [vmem:[%s761_s1 + $0x28] sm:$0xff]  }
   0x8   :  { %505 = vmatpush3.bf16.msra.mxu0 %v564_v6  ;;  %v573_v15 = vld [vmem:[%s761_s1 + $0x98] sm:$0xff]   ;;  %v577_v19 = vld [vmem:[%s761_s1 + $0xa0] sm:$0xff]   ;;  %v581_v23 = vld [vmem:[%s761_s1 + $0xa8] sm:$0xff]  }
   0x9   :  { %533 = vmatpush3.bf16.msra.mxu1 %v565_v7  ;;  %506 = vmatprep.subr.bf16.mxu0 %v566_v8  ;;  %v582_v24 = vld [vmem:[%s761_s1 + $0x70] sm:$0xff]   ;;  %v586_v28 = vld [vmem:[%s761_s1 + $0x78] sm:$0xff]   ;;  %v453_v42 = vld [vmem:[%s763_s2] ss:$0 sm:$0xff] }
   0xa   :  { %534 = vmatprep.subr.bf16.mxu1 %v567_v9  ;;  %v583_v25 = vld [vmem:[%s761_s1 + $0xf0] sm:$0xff]   ;;  %v587_v29 = vld [vmem:[%s761_s1 + $0xf8] sm:$0xff]  }
   0xb   :  { %v584_v26 = vld [vmem:[%s761_s1 + $0x30] sm:$0xff]   ;;  %v588_v30 = vld [vmem:[%s761_s1 + $0x38] sm:$0xff]  }
   0xc   :  { %507 = vmatpush3.bf16.msra.mxu0 %v568_v10  ;;  %v585_v27 = vld [vmem:[%s761_s1 + $0xb0] sm:$0xff]   ;;  %v589_v31 = vld [vmem:[%s761_s1 + $0xb8] sm:$0xff]  }
   0xd   :  { %535 = vmatpush3.bf16.msra.mxu1 %v569_v11  ;;  %508 = vmatprep.subr.bf16.mxu0 %v570_v12  ;;  %v590_v32 = vld [vmem:[%s762_s0] ss:$16 sps:$4 sm:$0xff]   ;;  %v592_v33 = vld [vmem:[%s762_s0 + $0x4] ss:$16 sps:$4 sm:$0xff]   ;;  %v593_v34 = vld [vmem:[%s762_s0 + $0x8] ss:$16 sps:$4 sm:$0xff]  }
   0xe   :  { %536 = vmatprep.subr.bf16.mxu1 %v571_v13  ;;  %v595_v35 = vld [vmem:[%s762_s0 + $0xc] ss:$16 sps:$4 sm:$0xff]   ;;  %358 = vmatprep.mubr.bf16.mxu0 %v592_v33  ;;  %v596_v36 = vld [vmem:[%s762_s0 + $0x24] ss:$16 sps:$4 sm:$0xff]   ;;  %v600_v38 = vld [vmem:[%s762_s0 + $0x20] ss:$16 sps:$4 sm:$0xff]  }
   0xf   :  { %407 = vmatprep.mubr.bf16.mxu1 %v595_v35  ;;  %v598_v37 = vld [vmem:[%s762_s0 + $0x2c] ss:$16 sps:$4 sm:$0xff]   ;;  %v601_v39 = vld [vmem:[%s762_s0 + $0x28] ss:$16 sps:$4 sm:$0xff]  }
  0x10   :  { %509 = vmatpush3.bf16.msra.mxu0 %v572_v14 }
  0x11   :  { %537 = vmatpush3.bf16.msra.mxu1 %v573_v15  ;;  %510 = vmatprep.subr.bf16.mxu0 %v574_v16 }
  0x12   :  { %538 = vmatprep.subr.bf16.mxu1 %v575_v17 }
  0x14   :  { %511 = vmatpush3.bf16.msra.mxu0 %v576_v18 }
  0x15   :  { %539 = vmatpush3.bf16.msra.mxu1 %v577_v19  ;;  %512 = vmatprep.subr.bf16.mxu0 %v578_v20 }
  0x16   :  { %540 = vmatprep.subr.bf16.mxu1 %v579_v21 }
  0x18   :  { %513 = vmatpush3.bf16.msra.mxu0 %v580_v22 }
  0x19   :  { %541 = vmatpush3.bf16.msra.mxu1 %v581_v23  ;;  %514 = vmatprep.subr.bf16.mxu0 %v582_v24 }
  0x1a   :  { %542 = vmatprep.subr.bf16.mxu1 %v583_v25 }
  0x1c   :  { %515 = vmatpush3.bf16.msra.mxu0 %v584_v26 }
  0x1d   :  { %543 = vmatpush3.bf16.msra.mxu1 %v585_v27  ;;  %516 = vmatprep.subr.bf16.mxu0 %v586_v28 }
  0x1e   :  { %544 = vmatprep.subr.bf16.mxu1 %v587_v29 }
  0x20   :  { %517 = vmatpush3.bf16.msra.mxu0 %v588_v30 }
  0x21   :  { %545 = vmatpush3.bf16.msra.mxu1 %v589_v31 }
  0x23   :  { %359 = vmatmul.mubr.bf16.vlgmr.msra.gmra.mrb[0].mxu0 %v590_v32 }
  0x24   :  { %408 = vmatmul.mubr.bf16.vlgmr.msra.gmra.mrb[0].mxu1 %v593_v34  ;;  %366 = vmatprep.mubr.bf16.mxu0 %v596_v36 }
  0x25   :  { %415 = vmatprep.mubr.bf16.mxu1 %v598_v37 }
  0x2b   :  { %367 = vmatmul.mubr.bf16.gmra.mrb[4].mxu0 %v600_v38 }
  0x2c   :  { %416 = vmatmul.mubr.bf16.gmra.mrb[4].mxu1 %v601_v39 }
  0xf6   :  { %v518_v40 = vpop.f32.mrb[0].mxu0 }
  0xf7   :  { %v546_v41 = vpop.f32.mrb[0].mxu1  ;;  %v519_v43 = vpop.f32.mrb[1].mxu0 }
  0xf8   :  { %v520_v44 = vadd.f32 %v519_v43, %v518_v40  ;;  %v547_v45 = vpop.f32.mrb[1].mxu1  ;;  %v521_v46 = vpop.f32.mrb[2].mxu0 }
  0xf9   :  { %v548_v47 = vadd.f32 %v547_v45, %v546_v41  ;;  %v549_v48 = vpop.f32.mrb[2].mxu1  ;;  %v522_v49 = vpop.f32.mrb[3].mxu0 }
  0xfa   :  { %v361_v50 = vadd.f32 %v520_v44, %v453_v42  ;;  %v523_v51 = vadd.f32 %v522_v49, %v521_v46  ;;  %v550_v52 = vpop.f32.mrb[3].mxu1 }
  0xfb   :  { %v551_v53 = vadd.f32 %v550_v52, %v549_v48 }
  0xfc   :  { %v410_v54 = vadd.f32 %v548_v47, %v361_v50  ;;  %v364_v55 = vadd.f32 %v523_v51, %v453_v42 }
  0xfe   :  { %v424_v56 = vmax.f32 %v410_v54, 0.0  ;;  %v413_v57 = vadd.f32 %v551_v53, %v364_v55  ;;  %v524_v58 = vpop.f32.mrb[4].mxu0 }
  0xff   :  { %v552_v59 = vpop.f32.mrb[4].mxu1  ;;  %v525_v60 = vpop.f32.mrb[5].mxu0 }
 0x100   :  { %v498_v61 = vpack.c.bf16 %v424_v56, %v424_v56  ;;  %v425_v62 = vmax.f32 %v413_v57, 0.0  ;;  %v526_v63 = vadd.f32 %v525_v60, %v524_v58  ;;  %v553_v0 = vpop.f32.mrb[5].mxu1  ;;  %v527_v1 = vpop.f32.mrb[6].mxu0 }
 0x101   :  { %v554_v2 = vadd.f32 %v553_v0, %v552_v59  ;;  %v555_v3 = vpop.f32.mrb[6].mxu1  ;;  %v528_v4 = vpop.f32.mrb[7].mxu0 }
 0x102   :  { %445 = vst.msk [vmem:[%s764_s3] sm:$0xf] %vm444_vm0, %v498_v61  ;;  %v499_v5 = vpack.c.bf16 %v425_v62, %v425_v62  ;;  %v369_v6 = vadd.f32 %v526_v63, %v453_v42  ;;  %v529_v7 = vadd.f32 %v528_v4, %v527_v1  ;;  %v556_v8 = vpop.f32.mrb[7].mxu1 }
 0x103   :  { %v557_v9 = vadd.f32 %v556_v8, %v555_v3 }
 0x104   :  { %446 = vst.msk [vmem:[%s764_s3 + $0x4] sm:$0xf] %vm444_vm0, %v499_v5  ;;  %v418_v10 = vadd.f32 %v554_v2, %v369_v6  ;;  %v372_v11 = vadd.f32 %v529_v7, %v453_v42 }
 0x106   :  { %v426_v12 = vmax.f32 %v418_v10, 0.0  ;;  %v421_v13 = vadd.f32 %v557_v9, %v372_v11 }
 0x108   :  { %v500_v14 = vpack.c.bf16 %v426_v12, %v426_v12  ;;  %v427_v15 = vmax.f32 %v421_v13, 0.0 }
 0x10a   :  { %447 = vst.msk [vmem:[%s764_s3 + $0x8] sm:$0xf] %vm444_vm0, %v500_v14  ;;  %v501_v16 = vpack.c.bf16 %v427_v15, %v427_v15 }
 0x10c   :  { %448 = vst.msk [vmem:[%s764_s3 + $0xc] sm:$0xf] %vm444_vm0, %v501_v16 }

// kernel: dqn_forward.6
= control target key start
LH: loop header
LB: loop body
LE: loop exit
PB: predicated region body
PF: predicated region fallthrough
CT: control target
= control target key end

     0   :  { %v657_v35 = vmov 0.0   ;;  %vm658_vm0 = vmmov 0   ;;  %vm485_vm1 = vcmask 519168   ;;  %s814_s1 = inlined_call_operand.vmem [shape: bf16[640,64], index: 1, kind: input, shape index: {}]   ;;  %s815_s0 = inlined_call_operand.vmem [shape: bf16[8,640], index: 0, kind: input, shape index: {}]   ;;  %s816_s2 = inlined_call_operand.vmem [shape: f32[1,64], index: 2, kind: input, shape index: {}]   ;;  %s817_s3 = inlined_call_operand.vmem [shape: bf16[8,64], index: 3, kind: output, shape index: {}]  }
   0x1   :  { %v612_v0 = vld [vmem:[%s814_s1 + $0x40] sm:$0xff]   ;;  %v616_v4 = vld [vmem:[%s814_s1 + $0x48] sm:$0xff]   ;;  %v620_v8 = vld [vmem:[%s814_s1 + $0x50] sm:$0xff]  }
   0x2   :  { %v613_v1 = vld [vmem:[%s814_s1] sm:$0xff]   ;;  %537 = vmatprep.subr.bf16.mxu0 %v612_v0  ;;  %v617_v5 = vld [vmem:[%s814_s1 + $0x8] sm:$0xff]   ;;  %v621_v9 = vld [vmem:[%s814_s1 + $0x10] sm:$0xff]  }
   0x3   :  { %v614_v2 = vld [vmem:[%s814_s1 + $0xc0] sm:$0xff]   ;;  %538 = vmatpush3.bf16.msra.mxu0 %v613_v1  ;;  %v618_v6 = vld [vmem:[%s814_s1 + $0xc8] sm:$0xff]   ;;  %v622_v10 = vld [vmem:[%s814_s1 + $0xd0] sm:$0xff]  }
   0x4   :  { %v615_v3 = vld [vmem:[%s814_s1 + $0x80] sm:$0xff]   ;;  %559 = vmatprep.subr.bf16.mxu1 %v614_v2  ;;  %539 = vmatprep.subr.bf16.mxu0 %v616_v4  ;;  %v619_v7 = vld [vmem:[%s814_s1 + $0x88] sm:$0xff]   ;;  %v623_v11 = vld [vmem:[%s814_s1 + $0x90] sm:$0xff]  }
   0x5   :  { %560 = vmatpush3.bf16.msra.mxu1 %v615_v3  ;;  %v624_v12 = vld [vmem:[%s814_s1 + $0x58] sm:$0xff]   ;;  %v628_v16 = vld [vmem:[%s814_s1 + $0x60] sm:$0xff]   ;;  %v632_v20 = vld [vmem:[%s814_s1 + $0x68] sm:$0xff]  }
   0x6   :  { %561 = vmatprep.subr.bf16.mxu1 %v618_v6  ;;  %v625_v13 = vld [vmem:[%s814_s1 + $0x18] sm:$0xff]   ;;  %v629_v17 = vld [vmem:[%s814_s1 + $0x20] sm:$0xff]   ;;  %v633_v21 = vld [vmem:[%s814_s1 + $0x28] sm:$0xff]  }
   0x7   :  { %540 = vmatpush3.bf16.msra.mxu0 %v617_v5  ;;  %v626_v14 = vld [vmem:[%s814_s1 + $0xd8] sm:$0xff]   ;;  %v630_v18 = vld [vmem:[%s814_s1 + $0xe0] sm:$0xff]   ;;  %v634_v22 = vld [vmem:[%s814_s1 + $0xe8] sm:$0xff]  }
   0x8   :  { %541 = vmatprep.subr.bf16.mxu0 %v620_v8  ;;  %v627_v15 = vld [vmem:[%s814_s1 + $0x98] sm:$0xff]   ;;  %v631_v19 = vld [vmem:[%s814_s1 + $0xa0] sm:$0xff]   ;;  %v635_v23 = vld [vmem:[%s814_s1 + $0xa8] sm:$0xff]  }
   0x9   :  { %562 = vmatpush3.bf16.msra.mxu1 %v619_v7  ;;  %v636_v24 = vld [vmem:[%s814_s1 + $0x70] sm:$0xff]   ;;  %v640_v28 = vld [vmem:[%s814_s1 + $0x78] sm:$0xff]   ;;  %v15_v31 = vld [vmem:[%s815_s0] sm:$0xff] }
   0xa   :  { %563 = vmatprep.subr.bf16.mxu1 %v622_v10  ;;  %v637_v25 = vld [vmem:[%s814_s1 + $0x30] sm:$0xff]   ;;  %v641_v29 = vld [vmem:[%s814_s1 + $0x38] sm:$0xff]   ;;  %v492_v32 = vcombine.low %v15_v31, %v15_v31  ;;  %v493_v33 = vcombine.high %v15_v31, %v15_v31  ;;  %v16_v36 = vld [vmem:[%s815_s0 + $0x8] sm:$0xff] }
   0xb   :  { %542 = vmatpush3.bf16.msra.mxu0 %v621_v9  ;;  %v638_v26 = vld [vmem:[%s814_s1 + $0xf0] sm:$0xff]   ;;  %v642_v30 = vld [vmem:[%s814_s1 + $0xf8] sm:$0xff]   ;;  %v494_v37 = vcombine.low %v16_v36, %v16_v36  ;;  %v495_v38 = vcombine.high %v16_v36, %v16_v36  ;;  %v649_v39 = vld [vmem:[%s814_s1 + $0x100] sm:$0xff]  }
   0xc   :  { %543 = vmatprep.subr.bf16.mxu0 %v624_v12  ;;  %v639_v27 = vld [vmem:[%s814_s1 + $0xb0] sm:$0xff]   ;;  %v646_v34 = vld [vmem:[%s814_s1 + $0xb8] sm:$0xff]   ;;  %395 = vmatprep.mubr.bf16.mxu0 %v493_v33  ;;  %v650_v40 = vld [vmem:[%s814_s1 + $0x108] sm:$0xff]  }
   0xd   :  { %564 = vmatpush3.bf16.msra.mxu1 %v623_v11  ;;  %435 = vmatprep.mubr.bf16.mxu1 %v495_v38  ;;  %v651_v41 = vld [vmem:[%s814_s1 + $0x110] sm:$0xff]   ;;  %v652_v42 = vld [vmem:[%s814_s1 + $0x118] sm:$0xff]   ;;  %v653_v43 = vld [vmem:[%s814_s1 + $0x120] sm:$0xff]  }
   0xe   :  { %565 = vmatprep.subr.bf16.mxu1 %v626_v14  ;;  %v654_v44 = vld [vmem:[%s814_s1 + $0x128] sm:$0xff]   ;;  %v655_v45 = vld [vmem:[%s814_s1 + $0x130] sm:$0xff]   ;;  %v656_v46 = vld [vmem:[%s814_s1 + $0x138] sm:$0xff]  }
   0xf   :  { %544 = vmatpush3.bf16.msra.mxu0 %v625_v13  ;;  %v645_v47 = vld [vmem:[%s815_s0 + $0x10] ss:$0 sps:$4 sm:$0xff]   ;;  %v491_v49 = vld [vmem:[%s816_s2] ss:$0 sm:$0xff] }
  0x10   :  { %545 = vmatprep.subr.bf16.mxu0 %v628_v16 }
  0x11   :  { %566 = vmatpush3.bf16.msra.mxu1 %v627_v15 }
  0x12   :  { %567 = vmatprep.subr.bf16.mxu1 %v630_v18 }
  0x13   :  { %546 = vmatpush3.bf16.msra.mxu0 %v629_v17 }
  0x14   :  { %547 = vmatprep.subr.bf16.mxu0 %v632_v20 }
  0x15   :  { %568 = vmatpush3.bf16.msra.mxu1 %v631_v19 }
  0x16   :  { %569 = vmatprep.subr.bf16.mxu1 %v634_v22 }
  0x17   :  { %548 = vmatpush3.bf16.msra.mxu0 %v633_v21 }
  0x18   :  { %549 = vmatprep.subr.bf16.mxu0 %v636_v24 }
  0x19   :  { %570 = vmatpush3.bf16.msra.mxu1 %v635_v23 }
  0x1a   :  { %571 = vmatprep.subr.bf16.mxu1 %v638_v26 }
  0x1b   :  { %550 = vmatpush3.bf16.msra.mxu0 %v637_v25 }
  0x1c   :  { %551 = vmatprep.subr.bf16.mxu0 %v640_v28 }
  0x1d   :  { %572 = vmatpush3.bf16.msra.mxu1 %v639_v27 }
  0x1e   :  { %573 = vmatprep.subr.bf16.mxu1 %v642_v30 }
  0x1f   :  { %552 = vmatpush3.bf16.msra.mxu0 %v641_v29 }
  0x20   :  { %590 = vmatprep.subr.bf16.mxu0 %v657_v35 }
  0x21   :  { %574 = vmatpush3.bf16.msra.mxu1 %v646_v34 }
  0x22   :  { %396 = vmatmul.mubr.bf16.vlgmr.msra.gmra.mrb[0].mxu0 %v492_v32 }
  0x23   :  { %591 = vmatpush3.bf16.msra.mxu0 %v649_v39  ;;  %606 = vmatprep.mubr.msk.bf16.mxu0 %vm658_vm0, %v657_v35 }
  0x24   :  { %436 = vmatmul.mubr.bf16.vlgmr.msra.gmra.mrb[0].mxu1 %v494_v37  ;;  %592 = vmatprep.subr.bf16.mxu0 %v657_v35 }
  0x27   :  { %593 = vmatpush3.bf16.msra.mxu0 %v650_v40 }
  0x28   :  { %594 = vmatprep.subr.bf16.mxu0 %v657_v35 }
  0x2b   :  { %595 = vmatpush3.bf16.msra.mxu0 %v651_v41 }
  0x2c   :  { %596 = vmatprep.subr.bf16.mxu0 %v657_v35 }
  0x2f   :  { %597 = vmatpush3.bf16.msra.mxu0 %v652_v42 }
  0x30   :  { %598 = vmatprep.subr.bf16.mxu0 %v657_v35 }
  0x33   :  { %599 = vmatpush3.bf16.msra.mxu0 %v653_v43 }
  0x34   :  { %600 = vmatprep.subr.bf16.mxu0 %v657_v35 }
  0x37   :  { %601 = vmatpush3.bf16.msra.mxu0 %v654_v44 }
  0x38   :  { %602 = vmatprep.subr.bf16.mxu0 %v657_v35 }
  0x3b   :  { %603 = vmatpush3.bf16.msra.mxu0 %v655_v45 }
  0x3c   :  { %604 = vmatprep.subr.bf16.mxu0 %v657_v35 }
  0x3f   :  { %605 = vmatpush3.bf16.msra.mxu0 %v656_v46 }
  0x42   :  { %607 = vmatmul.mubr.bf16.vlgmr.msra.gmra.mrb[4].mxu0 %v645_v47 }
  0xf5   :  { %v553_v48 = vpop.f32.mrb[0].mxu0 }
  0xf6   :  { %v554_v50 = vpop.f32.mrb[1].mxu0 }
  0xf7   :  { %v555_v51 = vadd.f32 %v554_v50, %v553_v48  ;;  %v556_v52 = vpop.f32.mrb[2].mxu0  ;;  %v575_v53 = vpop.f32.mrb[0].mxu1 }
  0xf8   :  { %v557_v54 = vpop.f32.mrb[3].mxu0  ;;  %v576_v55 = vpop.f32.mrb[1].mxu1 }
  0xf9   :  { %v398_v56 = vadd.f32 %v555_v51, %v491_v49  ;;  %v577_v57 = vadd.f32 %v576_v55, %v575_v53  ;;  %v578_v58 = vpop.f32.mrb[2].mxu1 }
  0xfa   :  { %v579_v59 = vpop.f32.mrb[3].mxu1 }
  0xfb   :  { %v438_v60 = vadd.f32 %v577_v57, %v398_v56 }
 0x115   :  { %v477_v61 = vpop.f32.mrb[4].mxu0 }
 0x116   :  { %v478_v62 = vadd.f32 %v477_v61, %v438_v60  ;;  %v608_v63 = vpop.f32.mrb[5].mxu0 }
 0x117   :  { %v480_v0 = vpop.f32.mrb[6].mxu0 }
 0x118   :  { %v483_v1 = vmax.f32 %v478_v62, 0.0  ;;  %v609_v2 = vpop.f32.mrb[7].mxu0 }
 0x11a   :  { %v484_v3 = vpack.c.bf16 %v483_v1, %v483_v1 }
 0x11c   :  { %486 = vst.msk [vmem:[%s817_s3] sm:$0xf] %vm485_vm1, %v484_v3 }

// kernel: dqn_forward.7
= control target key start
LH: loop header
LB: loop body
LE: loop exit
PB: predicated region body
PF: predicated region fallthrough
CT: control target
= control target key end

     0   :  { %v89_v38 = vlaneseq  ;;  %v1199_v39 = vmov 1966171168   ;;  %s1547_s0 = inlined_call_operand.vmem [shape: bf16[2,256], index: 0, kind: input, shape index: {}]   ;;  %s1548_s1 = inlined_call_operand.vmem [shape: bf16[256,512], index: 1, kind: input, shape index: {}]   ;;  %s1549_s2 = inlined_call_operand.vmem [shape: f32[1,512], index: 2, kind: input, shape index: {}]   ;;  %s1550_s3 = inlined_call_operand.vmem [shape: bf16[512,4], index: 3, kind: input, shape index: {}]   ;;  %s1551_s4 = inlined_call_operand.vmem [shape: f32[1,4], index: 4, kind: input, shape index: {}]   ;;  %s1552_s5 = inlined_call_operand.hbm [shape: f32[2,4], index: 5, kind: output, shape index: {}]  }
   0x1   :  { %v1047_v0 = vld [vmem:[%s1548_s1 + $0x4] ss:$16 sps:$4 sm:$0xff]   ;;  %v1049_v1 = vld [vmem:[%s1548_s1 + $0xc] ss:$16 sps:$4 sm:$0xff]   ;;  %v1051_v2 = vld [vmem:[%s1548_s1] ss:$16 sps:$4 sm:$0xff]   ;;  %v119_v40 = vunpack.c.l.s4 %v1199_v39 }
   0x2   :  { %454 = vmatprep.subr.bf16.mxu0 %v1047_v0  ;;  %v1052_v3 = vld [vmem:[%s1548_s1 + $0x8] ss:$16 sps:$4 sm:$0xff]   ;;  %495 = vmatprep.subr.bf16.mxu1 %v1049_v1  ;;  %v1053_v4 = vld [vmem:[%s1548_s1 + $0x24] ss:$16 sps:$4 sm:$0xff]   ;;  %v1055_v5 = vld [vmem:[%s1548_s1 + $0x2c] ss:$16 sps:$4 sm:$0xff]  }
   0x3   :  { %455 = vmatpush1.bf16.msra.mxu0 %v1051_v2  ;;  %496 = vmatpush1.bf16.msra.mxu1 %v1052_v3  ;;  %v1057_v6 = vld [vmem:[%s1548_s1 + $0x20] ss:$16 sps:$4 sm:$0xff]   ;;  %v1058_v7 = vld [vmem:[%s1548_s1 + $0x28] ss:$16 sps:$4 sm:$0xff]   ;;  %v1059_v8 = vld [vmem:[%s1548_s1 + $0x44] ss:$16 sps:$4 sm:$0xff]   ;;  %v120_v46 = vunpack.c.0.s8 %v119_v40 }
   0x4   :  { %456 = vmatprep.subr.bf16.mxu0 %v1053_v4  ;;  %497 = vmatprep.subr.bf16.mxu1 %v1055_v5  ;;  %v1061_v9 = vld [vmem:[%s1548_s1 + $0x4c] ss:$16 sps:$4 sm:$0xff]   ;;  %v1063_v10 = vld [vmem:[%s1548_s1 + $0x40] ss:$16 sps:$4 sm:$0xff]   ;;  %v1064_v11 = vld [vmem:[%s1548_s1 + $0x48] ss:$16 sps:$4 sm:$0xff]  }
   0x5   :  { %v1065_v12 = vld [vmem:[%s1548_s1 + $0x64] ss:$16 sps:$4 sm:$0xff]   ;;  %v1067_v13 = vld [vmem:[%s1548_s1 + $0x6c] ss:$16 sps:$4 sm:$0xff]   ;;  %v1069_v14 = vld [vmem:[%s1548_s1 + $0x60] ss:$16 sps:$4 sm:$0xff]  }
   0x6   :  { %v1070_v15 = vld [vmem:[%s1548_s1 + $0x68] ss:$16 sps:$4 sm:$0xff]   ;;  %v1071_v16 = vld [vmem:[%s1548_s1 + $0x84] ss:$16 sps:$4 sm:$0xff]   ;;  %v1073_v17 = vld [vmem:[%s1548_s1 + $0x8c] ss:$16 sps:$4 sm:$0xff]  }
   0x7   :  { %457 = vmatpush1.bf16.msra.mxu0 %v1057_v6  ;;  %498 = vmatpush1.bf16.msra.mxu1 %v1058_v7  ;;  %v1075_v18 = vld [vmem:[%s1548_s1 + $0x80] ss:$16 sps:$4 sm:$0xff]   ;;  %v1076_v19 = vld [vmem:[%s1548_s1 + $0x88] ss:$16 sps:$4 sm:$0xff]   ;;  %v1077_v20 = vld [vmem:[%s1548_s1 + $0xa4] ss:$16 sps:$4 sm:$0xff]  }
   0x8   :  { %458 = vmatprep.subr.bf16.mxu0 %v1059_v8  ;;  %499 = vmatprep.subr.bf16.mxu1 %v1061_v9  ;;  %v1079_v21 = vld [vmem:[%s1548_s1 + $0xac] ss:$16 sps:$4 sm:$0xff]   ;;  %v1081_v22 = vld [vmem:[%s1548_s1 + $0xa0] ss:$16 sps:$4 sm:$0xff]   ;;  %v1082_v23 = vld [vmem:[%s1548_s1 + $0xa8] ss:$16 sps:$4 sm:$0xff]  }
   0x9   :  { %v1083_v24 = vld [vmem:[%s1548_s1 + $0xc4] ss:$16 sps:$4 sm:$0xff]   ;;  %v1085_v25 = vld [vmem:[%s1548_s1 + $0xcc] ss:$16 sps:$4 sm:$0xff]   ;;  %v1087_v26 = vld [vmem:[%s1548_s1 + $0xc0] ss:$16 sps:$4 sm:$0xff]  }
   0xa   :  { %v1088_v27 = vld [vmem:[%s1548_s1 + $0xc8] ss:$16 sps:$4 sm:$0xff]   ;;  %v1089_v28 = vld [vmem:[%s1548_s1 + $0xe4] ss:$16 sps:$4 sm:$0xff]   ;;  %v1091_v29 = vld [vmem:[%s1548_s1 + $0xec] ss:$16 sps:$4 sm:$0xff]  }
   0xb   :  { %459 = vmatpush1.bf16.msra.mxu0 %v1063_v10  ;;  %500 = vmatpush1.bf16.msra.mxu1 %v1064_v11  ;;  %v1093_v30 = vld [vmem:[%s1548_s1 + $0xe0] ss:$16 sps:$4 sm:$0xff]   ;;  %v1094_v31 = vld [vmem:[%s1548_s1 + $0xe8] ss:$16 sps:$4 sm:$0xff]   ;;  %v1095_v32 = vld [vmem:[%s1548_s1 + $0x104] ss:$16 sps:$4 sm:$0xff]  }
   0xc   :  { %460 = vmatprep.subr.bf16.mxu0 %v1065_v12  ;;  %501 = vmatprep.subr.bf16.mxu1 %v1067_v13  ;;  %v1097_v33 = vld [vmem:[%s1548_s1 + $0x10c] ss:$16 sps:$4 sm:$0xff]   ;;  %v1099_v34 = vld [vmem:[%s1548_s1 + $0x100] ss:$16 sps:$4 sm:$0xff]   ;;  %v1100_v35 = vld [vmem:[%s1548_s1 + $0x108] ss:$16 sps:$4 sm:$0xff]  }
   0xd   :  { %v1101_v36 = vld [vmem:[%s1548_s1 + $0x124] ss:$16 sps:$4 sm:$0xff]   ;;  %v1103_v37 = vld [vmem:[%s1548_s1 + $0x12c] ss:$16 sps:$4 sm:$0xff]   ;;  %v1105_v41 = vld [vmem:[%s1548_s1 + $0x120] ss:$16 sps:$4 sm:$0xff]  }
   0xe   :  { %v1106_v42 = vld [vmem:[%s1548_s1 + $0x128] ss:$16 sps:$4 sm:$0xff]   ;;  %v1107_v43 = vld [vmem:[%s1548_s1 + $0x144] ss:$16 sps:$4 sm:$0xff]   ;;  %v1109_v44 = vld [vmem:[%s1548_s1 + $0x14c] ss:$16 sps:$4 sm:$0xff]  }
   0xf   :  { %461 = vmatpush1.bf16.msra.mxu0 %v1069_v14  ;;  %502 = vmatpush1.bf16.msra.mxu1 %v1070_v15  ;;  %v1357_v45 = vshrl.u32 %v89_v38, 7  ;;  %v1111_v47 = vld [vmem:[%s1548_s1 + $0x140] ss:$16 sps:$4 sm:$0xff]   ;;  %v1112_v48 = vld [vmem:[%s1548_s1 + $0x148] ss:$16 sps:$4 sm:$0xff]  }
  0x10   :  { %462 = vmatprep.subr.bf16.mxu0 %v1071_v16  ;;  %503 = vmatprep.subr.bf16.mxu1 %v1073_v17  ;;  %v1113_v49 = vld [vmem:[%s1548_s1 + $0x164] ss:$16 sps:$4 sm:$0xff]   ;;  %v1115_v50 = vld [vmem:[%s1548_s1 + $0x16c] ss:$16 sps:$4 sm:$0xff]   ;;  %v1117_v51 = vld [vmem:[%s1548_s1 + $0x160] ss:$16 sps:$4 sm:$0xff]  }
  0x11   :  { %v1118_v52 = vld [vmem:[%s1548_s1 + $0x168] ss:$16 sps:$4 sm:$0xff]   ;;  %v123_v53 = vsub.s32 %v120_v46, %v1357_v45  ;;  %v903_v54 = vld.sshfl [vmem:[%s1547_s0] sm:$0x11 pattern:$0x75316420] }
  0x12   :  { %v1119_v55 = vld [vmem:[%s1548_s1 + $0x184] ss:$16 sps:$4 sm:$0xff]   ;;  %v117_v56 = vcombine.high %v903_v54, %v903_v54  ;;  %v1121_v57 = vld [vmem:[%s1548_s1 + $0x18c] ss:$16 sps:$4 sm:$0xff]   ;;  %v1123_v58 = vld [vmem:[%s1548_s1 + $0x180] ss:$16 sps:$4 sm:$0xff]  }
  0x13   :  { %463 = vmatpush1.bf16.msra.mxu0 %v1075_v18  ;;  %504 = vmatpush1.bf16.msra.mxu1 %v1076_v19  ;;  %v1124_v60 = vld [vmem:[%s1548_s1 + $0x188] ss:$16 sps:$4 sm:$0xff]   ;;  %v1125_v61 = vld [vmem:[%s1548_s1 + $0x1a4] ss:$16 sps:$4 sm:$0xff]   ;;  %v1127_v62 = vld [vmem:[%s1548_s1 + $0x1ac] ss:$16 sps:$4 sm:$0xff]   ;;  %v124_v12 = vrot.slane %v903_v54, %v123_v53 }
  0x14   :  { %464 = vmatprep.subr.bf16.mxu0 %v1077_v20  ;;  %505 = vmatprep.subr.bf16.mxu1 %v1079_v21  ;;  %v131_v59 = vrot.slane %v117_v56, %v123_v53  ;;  %v1129_v63 = vld [vmem:[%s1548_s1 + $0x1a0] ss:$16 sps:$4 sm:$0xff]   ;;  %v1130_v0 = vld [vmem:[%s1548_s1 + $0x1a8] ss:$16 sps:$4 sm:$0xff]   ;;  %v1131_v1 = vld [vmem:[%s1548_s1 + $0x1c4] ss:$16 sps:$4 sm:$0xff]  }
  0x15   :  { %v1133_v2 = vld [vmem:[%s1548_s1 + $0x1cc] ss:$16 sps:$4 sm:$0xff]   ;;  %v1135_v3 = vld [vmem:[%s1548_s1 + $0x1c0] ss:$16 sps:$4 sm:$0xff]   ;;  %v1136_v4 = vld [vmem:[%s1548_s1 + $0x1c8] ss:$16 sps:$4 sm:$0xff]  }
  0x16   :  { %486 = vmatprep.mubr.bf16.mxu0 %v131_v59  ;;  %527 = vmatprep.mubr.bf16.mxu1 %v131_v59  ;;  %v1137_v5 = vld [vmem:[%s1548_s1 + $0x1e4] ss:$16 sps:$4 sm:$0xff]   ;;  %v1139_v6 = vld [vmem:[%s1548_s1 + $0x1ec] ss:$16 sps:$4 sm:$0xff]   ;;  %v1141_v7 = vld [vmem:[%s1548_s1 + $0x1e0] ss:$16 sps:$4 sm:$0xff]  }
  0x17   :  { %465 = vmatpush1.bf16.msra.mxu0 %v1081_v22  ;;  %506 = vmatpush1.bf16.msra.mxu1 %v1082_v23  ;;  %v1142_v8 = vld [vmem:[%s1548_s1 + $0x1e8] ss:$16 sps:$4 sm:$0xff]   ;;  %v1143_v9 = vld [vmem:[%s1550_s3 + $0x40] sm:$0xff]   ;;  %v1151_v18 = vld [vmem:[%s1550_s3 + $0x50] sm:$0xff]  }
  0x18   :  { %466 = vmatprep.subr.bf16.mxu0 %v1083_v24  ;;  %507 = vmatprep.subr.bf16.mxu1 %v1085_v25  ;;  %v1144_v10 = vld [vmem:[%s1550_s3 + $0xc0] sm:$0xff]   ;;  %v1147_v14 = vld [vmem:[%s1550_s3 + $0x48] sm:$0xff]   ;;  %v1152_v19 = vld [vmem:[%s1550_s3 + $0xd0] sm:$0xff]  }
  0x19   :  { %v1145_v11 = vld [vmem:[%s1550_s3] sm:$0xff]   ;;  %v1148_v15 = vld [vmem:[%s1550_s3 + $0xc8] sm:$0xff]   ;;  %v1153_v20 = vld [vmem:[%s1550_s3 + $0x10] sm:$0xff]  }
  0x1a   :  { %v1146_v13 = vld [vmem:[%s1550_s3 + $0x80] sm:$0xff]   ;;  %v1149_v16 = vld [vmem:[%s1550_s3 + $0x8] sm:$0xff]   ;;  %v1154_v21 = vld [vmem:[%s1550_s3 + $0x90] sm:$0xff]  }
  0x1b   :  { %467 = vmatpush1.bf16.msra.mxu0 %v1087_v26  ;;  %508 = vmatpush1.bf16.msra.mxu1 %v1088_v27  ;;  %v1150_v17 = vld [vmem:[%s1550_s3 + $0x88] sm:$0xff]   ;;  %v1155_v22 = vld [vmem:[%s1550_s3 + $0x58] sm:$0xff]  }
  0x1c   :  { %468 = vmatprep.subr.bf16.mxu0 %v1089_v28  ;;  %509 = vmatprep.subr.bf16.mxu1 %v1091_v29  ;;  %v1156_v23 = vld [vmem:[%s1550_s3 + $0xd8] sm:$0xff]  }
  0x1f   :  { %469 = vmatpush1.bf16.msra.mxu0 %v1093_v30  ;;  %510 = vmatpush1.bf16.msra.mxu1 %v1094_v31 }
  0x20   :  { %470 = vmatprep.subr.bf16.mxu0 %v1095_v32  ;;  %511 = vmatprep.subr.bf16.mxu1 %v1097_v33 }
  0x23   :  { %471 = vmatpush1.bf16.msra.mxu0 %v1099_v34  ;;  %512 = vmatpush1.bf16.msra.mxu1 %v1100_v35 }
  0x24   :  { %472 = vmatprep.subr.bf16.mxu0 %v1101_v36  ;;  %513 = vmatprep.subr.bf16.mxu1 %v1103_v37 }
  0x27   :  { %473 = vmatpush1.bf16.msra.mxu0 %v1105_v41  ;;  %514 = vmatpush1.bf16.msra.mxu1 %v1106_v42 }
  0x28   :  { %474 = vmatprep.subr.bf16.mxu0 %v1107_v43  ;;  %515 = vmatprep.subr.bf16.mxu1 %v1109_v44 }
  0x2b   :  { %475 = vmatpush1.bf16.msra.mxu0 %v1111_v47  ;;  %516 = vmatpush1.bf16.msra.mxu1 %v1112_v48 }
  0x2c   :  { %476 = vmatprep.subr.bf16.mxu0 %v1113_v49  ;;  %517 = vmatprep.subr.bf16.mxu1 %v1115_v50 }
  0x2f   :  { %477 = vmatpush1.bf16.msra.mxu0 %v1117_v51  ;;  %518 = vmatpush1.bf16.msra.mxu1 %v1118_v52 }
  0x30   :  { %478 = vmatprep.subr.bf16.mxu0 %v1119_v55  ;;  %519 = vmatprep.subr.bf16.mxu1 %v1121_v57 }
  0x33   :  { %479 = vmatpush1.bf16.msra.mxu0 %v1123_v58  ;;  %520 = vmatpush1.bf16.msra.mxu1 %v1124_v60 }
  0x34   :  { %480 = vmatprep.subr.bf16.mxu0 %v1125_v61  ;;  %521 = vmatprep.subr.bf16.mxu1 %v1127_v62 }
  0x37   :  { %481 = vmatpush1.bf16.msra.mxu0 %v1129_v63  ;;  %522 = vmatpush1.bf16.msra.mxu1 %v1130_v0 }
  0x38   :  { %482 = vmatprep.subr.bf16.mxu0 %v1131_v1  ;;  %523 = vmatprep.subr.bf16.mxu1 %v1133_v2 }
  0x3b   :  { %483 = vmatpush1.bf16.msra.mxu0 %v1135_v3  ;;  %524 = vmatpush1.bf16.msra.mxu1 %v1136_v4 }
  0x3c   :  { %484 = vmatprep.subr.bf16.mxu0 %v1137_v5  ;;  %525 = vmatprep.subr.bf16.mxu1 %v1139_v6 }
  0x3f   :  { %485 = vmatpush1.bf16.msra.mxu0 %v1141_v7  ;;  %526 = vmatpush1.bf16.msra.mxu1 %v1142_v8 }
  0x40   :  { %1001 = vmatprep.subr.bf16.mxu0 %v1143_v9  ;;  %1023 = vmatprep.subr.bf16.mxu1 %v1144_v10 }
  0x42   :  { %487 = vmatmul.mubr.bf16.vlgmr.msra.gmra.mrb[0].mxu0 %v124_v12  ;;  %528 = vmatmul.mubr.bf16.vlgmr.msra.gmra.mrb[0].mxu1 %v124_v12 }
  0x43   :  { %1002 = vmatpush3.bf16.msra.mxu0 %v1145_v11  ;;  %1024 = vmatpush3.bf16.msra.mxu1 %v1146_v13 }
  0x44   :  { %1003 = vmatprep.subr.bf16.mxu0 %v1147_v14  ;;  %1025 = vmatprep.subr.bf16.mxu1 %v1148_v15 }
  0x47   :  { %1004 = vmatpush3.bf16.msra.mxu0 %v1149_v16  ;;  %1026 = vmatpush3.bf16.msra.mxu1 %v1150_v17 }
  0x48   :  { %1005 = vmatprep.subr.bf16.mxu0 %v1151_v18  ;;  %1027 = vmatprep.subr.bf16.mxu1 %v1152_v19 }
  0x49   :  { %10 = vsyncpa [#allocation3], 0  ;;  %v1157_v24 = vld [vmem:[%s1550_s3 + $0x18] sm:$0xff]   ;;  %v1159_v26 = vld [vmem:[%s1550_s3 + $0x60] sm:$0xff]   ;;  %v91_v42 = vsub.s32 0, %v1357_v45  ;;  %v99_v43 = vsub.s32 2, %v1357_v45 }
  0x4a   :  { %v1158_v25 = vld [vmem:[%s1550_s3 + $0x98] sm:$0xff]   ;;  %v1160_v27 = vld [vmem:[%s1550_s3 + $0xe0] sm:$0xff]   ;;  %v1163_v30 = vld [vmem:[%s1550_s3 + $0x68] sm:$0xff]   ;;  %v95_v46 = vsub.s32 1, %v1357_v45  ;;  %v103_v47 = vsub.s32 3, %v1357_v45  ;;  %s1200_s7 = smov [#allocation2]  }
  0x4b   :  { %1006 = vmatpush3.bf16.msra.mxu0 %v1153_v20  ;;  %1028 = vmatpush3.bf16.msra.mxu1 %v1154_v21  ;;  %v1161_v28 = vld [vmem:[%s1550_s3 + $0x20] sm:$0xff]   ;;  %v1164_v31 = vld [vmem:[%s1550_s3 + $0xe8] sm:$0xff]   ;;  %v1167_v34 = vld [vmem:[%s1550_s3 + $0x70] sm:$0xff]   ;;  %s895_s8 = sshll.u32 %s1200_s7, 4  ;;  %vm887_vm0 = vcmask 25600   ;;  %s896_s8 = int_to_ptr.vmem [resolvable:$true] %s895_s8 }
  0x4c   :  { %1007 = vmatprep.subr.bf16.mxu0 %v1155_v22  ;;  %1029 = vmatprep.subr.bf16.mxu1 %v1156_v23  ;;  %v1162_v29 = vld [vmem:[%s1550_s3 + $0xa0] sm:$0xff]   ;;  %v1165_v32 = vld [vmem:[%s1550_s3 + $0x28] sm:$0xff]   ;;  %v1168_v35 = vld [vmem:[%s1550_s3 + $0xf0] sm:$0xff]   ;;  %s1175_s9 = scalar_lea.vmem %s896_s8, 32  ;;  %p1180_p1 = scmp.lt.s32.totalorder %s896_s8, %s896_s8 }
  0x4d   :  { %v1166_v33 = vld [vmem:[%s1550_s3 + $0xa8] sm:$0xff]   ;;  %v1169_v36 = vld [vmem:[%s1550_s3 + $0x30] sm:$0xff]   ;;  %v1171_v38 = vld [vmem:[%s1550_s3 + $0x78] sm:$0xff]   ;;  %p1176_p0 = scmp.ne.s32.totalorder %s896_s8, %s1175_s9  ;;  %p1181_p2 = scmp.lt.s32.totalorder %s1175_s9, %s1175_s9 }
  0x4e   :  { %v1170_v37 = vld [vmem:[%s1550_s3 + $0xb0] sm:$0xff]   ;;  %v1172_v39 = vld [vmem:[%s1550_s3 + $0xf8] sm:$0xff]   ;;  %v87_v44 = vld [vmem:[%s1549_s2] sm:$0xf] }
  0x4f   :  { %1008 = vmatpush3.bf16.msra.mxu0 %v1157_v24  ;;  %1030 = vmatpush3.bf16.msra.mxu1 %v1158_v25  ;;  %v1173_v40 = vld [vmem:[%s1550_s3 + $0x38] sm:$0xff]   ;;  %v92_v48 = vrot.slane %v87_v44, %v91_v42  ;;  %v100_v49 = vrot.slane %v87_v44, %v99_v43  ;;  %v96_v50 = vrot.slane %v87_v44, %v95_v46  ;;  %v968_v9 = vld [vmem:[%s1551_s4] ss:$0 sm:$0xff]  ;;  %p1182_p3 = por %p1181_p2, %p1180_p1 }
  0x50   :  { %1009 = vmatprep.subr.bf16.mxu0 %v1159_v26  ;;  %1031 = vmatprep.subr.bf16.mxu1 %v1160_v27  ;;  %v1174_v41 = vld [vmem:[%s1550_s3 + $0xb8] sm:$0xff]   ;;  %v104_v51 = vrot.slane %v87_v44, %v103_v47 }
  0x51   :  { %p1183_p4 = pnand %p1182_p3, %p1176_p0 }
  0x53   :  { %1010 = vmatpush3.bf16.msra.mxu0 %v1161_v28  ;;  %1032 = vmatpush3.bf16.msra.mxu1 %v1162_v29 }
  0x54   :  { %1011 = vmatprep.subr.bf16.mxu0 %v1163_v30  ;;  %1033 = vmatprep.subr.bf16.mxu1 %v1164_v31 }
  0x57   :  { %1012 = vmatpush3.bf16.msra.mxu0 %v1165_v32  ;;  %1034 = vmatpush3.bf16.msra.mxu1 %v1166_v33 }
  0x58   :  { %1013 = vmatprep.subr.bf16.mxu0 %v1167_v34  ;;  %1035 = vmatprep.subr.bf16.mxu1 %v1168_v35 }
  0x5b   :  { %1014 = vmatpush3.bf16.msra.mxu0 %v1169_v36  ;;  %1036 = vmatpush3.bf16.msra.mxu1 %v1170_v37 }
  0x5c   :  { %1015 = vmatprep.subr.bf16.mxu0 %v1171_v38  ;;  %1037 = vmatprep.subr.bf16.mxu1 %v1172_v39 }
  0x5f   :  { %1016 = vmatpush3.bf16.msra.mxu0 %v1173_v40  ;;  %1038 = vmatpush3.bf16.msra.mxu1 %v1174_v41 }
 0x115   :  { %v488_v52 = vpop.f32.mrb[0].mxu0  ;;  %v529_v53 = vpop.f32.mrb[0].mxu1 }
 0x116   :  { %v489_v54 = vadd.f32 %v488_v52, %v92_v48  ;;  %v530_v55 = vadd.f32 %v529_v53, %v100_v49  ;;  %v490_v56 = vpop.f32.mrb[1].mxu0  ;;  %v531_v57 = vpop.f32.mrb[1].mxu1 }
 0x117   :  { %v491_v58 = vadd.f32 %v490_v56, %v96_v50  ;;  %v532_v59 = vadd.f32 %v531_v57, %v104_v51  ;;  %v492_v60 = vpop.f32.mrb[2].mxu0  ;;  %v533_v61 = vpop.f32.mrb[2].mxu1 }
 0x118   :  { %v536_v62 = vmax.f32 %v489_v54, 0.0  ;;  %v538_v63 = vmax.f32 %v530_v55, 0.0  ;;  %v493_v0 = vpop.f32.mrb[3].mxu0  ;;  %v534_v1 = vpop.f32.mrb[3].mxu1 }
 0x119   :  { %v537_v2 = vmax.f32 %v491_v58, 0.0  ;;  %v539_v45 = vmax.f32 %v532_v59, 0.0 }
 0x11a   :  { %v542_v3 = vpack.c.bf16 %v538_v63, %v538_v63  ;;  %v540_v6 = vpack.c.bf16 %v536_v62, %v536_v62 }
 0x11b   :  { %v541_v4 = vpack.c.bf16 %v537_v2, %v537_v2  ;;  %v543_v5 = vpack.c.bf16 %v539_v45, %v539_v45 }
 0x11d   :  { %839 = vmatprep.mubr.bf16.mxu0 %v541_v4  ;;  %879 = vmatprep.mubr.bf16.mxu1 %v543_v5 }
 0x11e   :  { %840 = vmatmul.mubr.bf16.vlgmr.msra.gmra.mrb[4].mxu0 %v540_v6  ;;  %880 = vmatmul.mubr.bf16.vlgmr.msra.gmra.mrb[4].mxu1 %v542_v3 }
 0x1f1   :  { %v1017_v7 = vpop.f32.mrb[4].mxu0  ;;  %v1039_v8 = vpop.f32.mrb[4].mxu1 }
 0x1f2   :  { %v1018_v10 = vpop.f32.mrb[5].mxu0  ;;  %v1040_v11 = vpop.f32.mrb[5].mxu1 }
 0x1f3   :  { %v1019_v12 = vadd.f32 %v1018_v10, %v1017_v7  ;;  %v1041_v13 = vadd.f32 %v1040_v11, %v1039_v8  ;;  %v1020_v14 = vpop.f32.mrb[6].mxu0  ;;  %v1042_v15 = vpop.f32.mrb[6].mxu1 }
 0x1f4   :  { %v1021_v16 = vpop.f32.mrb[7].mxu0  ;;  %v1043_v17 = vpop.f32.mrb[7].mxu1 }
 0x1f5   :  { %v842_v18 = vadd.f32 %v1019_v12, %v968_v9 }
 0x1f7   :  { %v882_v19 = vadd.f32 %v1041_v13, %v842_v18 }
 0x1f9   :  { %888 = vst.msk [vmem:[#allocation2] sm:$0x3] %vm887_vm0, %v882_v19 }
 0x1fa   :  { %1186 = shalt.err (!%p1183_p4)
}
 0x1fb   :  { %s1187_s11 = scalar_lea.hbm %s1552_s5, 32 }
 0x1fc   :  { %p1188_p5 = scmp.ne.s32.totalorder %s1552_s5, %s1187_s11  ;;  %p1191_p6 = scmp.lt.u32.totalorder %s1187_s11, %s1552_s5 }
 0x1fe   :  { %p1193_p7 = pnand %p1191_p6, %p1188_p5 }
 0x200   :  { %1196 = shalt.err (!%p1193_p7)
}
 0x201   :  { %898 = dma.vmem_to_hbm [thread:$0]  %s896_s8, 32, %s1552_s5, [#allocation3]  }
 0x202   :  { %1197 = dma.done.wait [#allocation3], 32  }
 0x203   :  { %1198 = vsyncadd [#allocation3], 4294967264 }
 0x204   :  { %902 = vsyncpa [#allocation3], 1 }

</bundles_post_ra>
